<compile_context>
chip_gen: v6e
topology: v6e:2x2x1
jax: 0.10.0
libtpu: 0.0.40
codegen_flags: <defaults>
</compile_context>

<pallas_src>
import functools
import math

import jax
import jax.numpy as jnp
from jax.experimental import pallas as pl
from jax.experimental.pallas import tpu as pltpu


def _encoder_layer_kernel(q_ref, k_ref, v_ref,
                          wq_ref, bq_ref, wk_ref, bk_ref, wv_ref, bv_ref,
                          wo_ref, bo_ref, g1_ref, be1_ref,
                          w1_ref, bf1_ref, w2_ref, bf2_ref, g2_ref, be2_ref,
                          o_ref, *, bt, h, d_k, d_v, eps, mxu_dtype):
    rows, D = q_ref.shape              # rows = bt * S (flattened in the wrapper)
    S = rows // bt
    scale = 1.0 / math.sqrt(d_k)

    def mm(a, b):                      # MXU matmul: bf16 operands, f32 accumulation
        return jnp.dot(a.astype(mxu_dtype), b.astype(mxu_dtype),
                       preferred_element_type=jnp.float32)

    def ln(x, g, b):                   # LayerNorm, centered (two-pass) variance, f32
        mu = jnp.mean(x, axis=-1, keepdims=True)
        d = x - mu
        var = jnp.mean(d * d, axis=-1, keepdims=True)
        return d * jax.lax.rsqrt(var + eps) * g + b

    xq = q_ref[...]
    xk = k_ref[...]
    xv = v_ref[...]

    # --- fused Q/K/V projections: one big matmul per input -------------------
    qp = mm(xq, wq_ref[...]) + bq_ref[...]          # (rows, h*d_k)
    kp = mm(xk, wk_ref[...]) + bk_ref[...]          # (rows, h*d_k)
    vp = mm(xv, wv_ref[...]) + bv_ref[...]          # (rows, h*d_v)

    # --- per-head scaled dot-product attention (static unroll over heads) ----
    head_outs = []
    for hi in range(h):
        qh = qp[:, hi * d_k:(hi + 1) * d_k].reshape(bt, S, d_k)
        kh = kp[:, hi * d_k:(hi + 1) * d_k].reshape(bt, S, d_k)
        vh = vp[:, hi * d_v:(hi + 1) * d_v].reshape(bt, S, d_v)

        s = jnp.einsum('bqd,bkd->bqk', qh.astype(mxu_dtype), kh.astype(mxu_dtype),
                       preferred_element_type=jnp.float32) * scale   # (bt,S,S)
        s = s - jnp.max(s, axis=-1, keepdims=True)
        p = jnp.exp(s)
        # EUP approx reciprocal; no Newton refinement (per review).
        p = p * pl.reciprocal(jnp.sum(p, axis=-1, keepdims=True), approx=True)

        ho = jnp.einsum('bqk,bkd->bqd', p.astype(mxu_dtype), vh.astype(mxu_dtype),
                        preferred_element_type=jnp.float32)          # (bt,S,d_v)
        head_outs.append(ho.reshape(rows, d_v))

    # --- output projection: one (rows, h*d_v) @ (h*d_v, D) matmul ------------
    attn = mm(jnp.concatenate(head_outs, axis=-1), wo_ref[...]) + bo_ref[...]

    # --- residual + LayerNorm 1 ----------------------------------------------
    y = ln(xq + attn, g1_ref[...], be1_ref[...])

    # --- position-wise feed-forward -------------------------------------------
    f = jnp.maximum(mm(y, w1_ref[...]) + bf1_ref[...], 0.0)
    f = mm(f, w2_ref[...]) + bf2_ref[...]

    # --- residual + LayerNorm 2 ------------------------------------------------
    o_ref[...] = ln(y + f, g2_ref[...], be2_ref[...])


def _num_tensorcores():
    # 2-way batch split only pays off on chips with 2 TensorCores (v7x);
    # v5e/v6e are single-TC, where extra grid steps are pure per-step overhead.
    try:
        kind = jax.devices()[0].device_kind.lower()
        if "v7" in kind:
            return 2
    except Exception:
        pass
    return 1


def encoder_layer_pallas(q, k, v, params, *, h, d_k, d_v, eps=1e-5,
                         batch_tile=None, mxu_dtype=jnp.bfloat16):
    B, S, D = q.shape
    (wq, bq, wk, bk, wv, bv, wo, bo,
     g1, be1, w1, bf1, w2, bf2, g2, be2) = params

    # Matmul weights cast to the MXU dtype once in the wrapper (halves weight
    # bytes in VMEM/DMA); biases / LayerNorm affine params stay f32 because they
    # are added to f32 accumulations.
    row = lambda a: a.reshape(1, -1).astype(jnp.float32)
    wcast = lambda a: a.astype(mxu_dtype)
    weights = [wcast(wq), row(bq), wcast(wk), row(bk), wcast(wv), row(bv),
               wcast(wo), row(bo), row(g1), row(be1),
               wcast(w1), row(bf1), wcast(w2), row(bf2), row(g2), row(be2)]

    # Generation-aware batch tiling (caller can override via batch_tile=).
    if batch_tile is None:
        n_tc = _num_tensorcores()
        batch_tile = B // 2 if (n_tc >= 2 and B >= 2 and B % 2 == 0) else B
    assert B % batch_tile == 0, "batch_tile must divide B"
    nb = B // batch_tile

    # Wrapper-side flattening: the kernel sees 2-D (rows, D) blocks only.
    qf = q.reshape(B * S, D)
    kf = k.reshape(B * S, D)
    vf = v.reshape(B * S, D)

    seq_spec = pl.BlockSpec((batch_tile * S, D), lambda b: (b, 0))

    def full_spec(a):                    # constant index map -> fetched once
        nd = a.ndim
        return pl.BlockSpec(a.shape, lambda b, _nd=nd: (0,) * _nd)

    in_specs = [seq_spec, seq_spec, seq_spec] + [full_spec(w) for w in weights]

    kernel = functools.partial(_encoder_layer_kernel, bt=batch_tile, h=h,
                               d_k=d_k, d_v=d_v, eps=eps, mxu_dtype=mxu_dtype)

    out = pl.pallas_call(
        kernel,
        out_shape=jax.ShapeDtypeStruct((B * S, D), jnp.float32),
        grid=(nb,),
        in_specs=in_specs,
        out_specs=pl.BlockSpec((batch_tile * S, D), lambda b: (b, 0)),
        compiler_params=pltpu.CompilerParams(dimension_semantics=("parallel",)),
    )(qf, kf, vf, *weights)
    return out.reshape(B, S, D)


def encoder_layer_reference(q, k, v, params, *, h, d_k, d_v, eps=1e-5):
    (wq, bq, wk, bk, wv, bv, wo, bo,
     g1, be1, w1, bf1, w2, bf2, g2, be2) = params
    B, S, D = q.shape

    def ln(x, g, b):
        mu = jnp.mean(x, axis=-1, keepdims=True)
        var = jnp.mean((x - mu) ** 2, axis=-1, keepdims=True)
        return (x - mu) / jnp.sqrt(var + eps) * g + b

    qp = q @ wq + bq
    kp = k @ wk + bk
    vp = v @ wv + bv
    qh = qp.reshape(B, S, h, d_k).transpose(0, 2, 1, 3)          # (B,h,S,dk)
    kh = kp.reshape(B, S, h, d_k).transpose(0, 2, 3, 1)          # (B,h,dk,S)
    vh = vp.reshape(B, S, h, d_v).transpose(0, 2, 1, 3)          # (B,h,S,dv)
    att = jnp.matmul(qh, kh) / jnp.sqrt(jnp.float32(d_k))
    att = jax.nn.softmax(att, axis=-1)
    out = jnp.matmul(att, vh).transpose(0, 2, 1, 3).reshape(B, S, h * d_v)
    out = out @ wo + bo
    y = ln(q + out, g1, be1)
    f = jnp.maximum(y @ w1 + bf1, 0.0) @ w2 + bf2
    return ln(y + f, g2, be2)


def make_params(key, d_model, d_k, d_v, h, d_ff):
    ks = jax.random.split(key, 8)
    s = 0.05
    wq = jax.random.normal(ks[0], (d_model, h * d_k), jnp.float32) * s
    wk = jax.random.normal(ks[1], (d_model, h * d_k), jnp.float32) * s
    wv = jax.random.normal(ks[2], (d_model, h * d_v), jnp.float32) * s
    wo = jax.random.normal(ks[3], (h * d_v, d_model), jnp.float32) * s
    w1 = jax.random.normal(ks[4], (d_model, d_ff), jnp.float32) * s
    w2 = jax.random.normal(ks[5], (d_ff, d_model), jnp.float32) * s
    bq = jax.random.normal(ks[6], (h * d_k,), jnp.float32) * s
    bo = jax.random.normal(ks[7], (d_model,), jnp.float32) * s
    bk = jnp.zeros((h * d_k,), jnp.float32)
    bv = jnp.zeros((h * d_v,), jnp.float32)
    bf1 = jnp.zeros((d_ff,), jnp.float32)
    bf2 = jnp.zeros((d_model,), jnp.float32)
    g1 = jnp.ones((d_model,), jnp.float32)
    be1 = jnp.zeros((d_model,), jnp.float32)
    g2 = jnp.ones((d_model,), jnp.float32)
    be2 = jnp.zeros((d_model,), jnp.float32)
    return (wq, bq, wk, bk, wv, bv, wo, bo, g1, be1, w1, bf1, w2, bf2, g2, be2)


if __name__ == "__main__":
    # Small shapes consistent with the module: d_model=32, h=4, d_k=d_v=8, d_ff=64.
    B, S, D = 2, 8, 32
    H, DK, DV, DFF = 4, 8, 8, 64

    key = jax.random.PRNGKey(0)
    kq, kk, kv, kp = jax.random.split(key, 4)
    q = jax.random.normal(kq, (B, S, D), jnp.float32)
    k = jax.random.normal(kk, (B, S, D), jnp.float32)
    v = jax.random.normal(kv, (B, S, D), jnp.float32)
    params = make_params(kp, D, DK, DV, H, DFF)

    ref = encoder_layer_reference(q, k, v, params, h=H, d_k=DK, d_v=DV)

    # f32-operand path: tight check (2e-3 accounts for the approx EUP reciprocal
    # in the softmax now that the Newton refinement is dropped).
    out_f32 = encoder_layer_pallas(q, k, v, params, h=H, d_k=DK, d_v=DV,
                                   mxu_dtype=jnp.float32)
    out_f32 = jax.block_until_ready(out_f32)
    assert out_f32.shape == (B, S, D)
    assert jnp.allclose(out_f32, ref, atol=2e-3, rtol=2e-3), "f32 path mismatch"

    # Default fast path: bf16 MXU operands with f32 accumulation; tolerance
    # reflects bf16 rounding of unit-scale activations.
    out_bf16 = encoder_layer_pallas(q, k, v, params, h=H, d_k=DK, d_v=DV)
    out_bf16 = jax.block_until_ready(out_bf16)
    assert out_bf16.shape == (B, S, D)
    assert jnp.allclose(out_bf16, ref, atol=2e-2, rtol=2e-2), "bf16 path mismatch"

    print("KERNEL_OK")
</pallas_src>

<mosaic_0001>
module attributes {stable_mosaic.version = 11 : i64} {
  func.func @_encoder_layer_kernel(%arg0: i32, %arg1: memref<16x32xf32, #tpu.memory_space<vmem>>, %arg2: memref<16x32xf32, #tpu.memory_space<vmem>>, %arg3: memref<16x32xf32, #tpu.memory_space<vmem>>, %arg4: memref<32x32xf32, #tpu.memory_space<vmem>>, %arg5: memref<1x32xf32, #tpu.memory_space<vmem>>, %arg6: memref<32x32xf32, #tpu.memory_space<vmem>>, %arg7: memref<1x32xf32, #tpu.memory_space<vmem>>, %arg8: memref<32x32xf32, #tpu.memory_space<vmem>>, %arg9: memref<1x32xf32, #tpu.memory_space<vmem>>, %arg10: memref<32x32xf32, #tpu.memory_space<vmem>>, %arg11: memref<1x32xf32, #tpu.memory_space<vmem>>, %arg12: memref<1x32xf32, #tpu.memory_space<vmem>>, %arg13: memref<1x32xf32, #tpu.memory_space<vmem>>, %arg14: memref<32x64xf32, #tpu.memory_space<vmem>>, %arg15: memref<1x64xf32, #tpu.memory_space<vmem>>, %arg16: memref<64x32xf32, #tpu.memory_space<vmem>>, %arg17: memref<1x32xf32, #tpu.memory_space<vmem>>, %arg18: memref<1x32xf32, #tpu.memory_space<vmem>>, %arg19: memref<1x32xf32, #tpu.memory_space<vmem>>, %arg20: memref<16x32xf32, #tpu.memory_space<vmem>>) attributes {dimension_semantics = [#tpu.dimension_semantics<parallel>], iteration_bounds = array<i64: 1>, scalar_prefetch = 0 : i64, scratch_operands = 0 : i64, tpu.core_type = #tpu.core_type<tc>, window_params = [{transform_indices = @transform_0, window_bounds = array<i64: 16, 32>}, {transform_indices = @transform_1, window_bounds = array<i64: 16, 32>}, {transform_indices = @transform_2, window_bounds = array<i64: 16, 32>}, {pipeline_mode = #tpu.pipeline_mode<synchronous>, transform_indices = @transform_3, window_bounds = array<i64: 32, 32>}, {pipeline_mode = #tpu.pipeline_mode<synchronous>, transform_indices = @transform_4, window_bounds = array<i64: 1, 32>}, {pipeline_mode = #tpu.pipeline_mode<synchronous>, transform_indices = @transform_5, window_bounds = array<i64: 32, 32>}, {pipeline_mode = #tpu.pipeline_mode<synchronous>, transform_indices = @transform_6, window_bounds = array<i64: 1, 32>}, {pipeline_mode = #tpu.pipeline_mode<synchronous>, transform_indices = @transform_7, window_bounds = array<i64: 32, 32>}, {pipeline_mode = #tpu.pipeline_mode<synchronous>, transform_indices = @transform_8, window_bounds = array<i64: 1, 32>}, {pipeline_mode = #tpu.pipeline_mode<synchronous>, transform_indices = @transform_9, window_bounds = array<i64: 32, 32>}, {pipeline_mode = #tpu.pipeline_mode<synchronous>, transform_indices = @transform_10, window_bounds = array<i64: 1, 32>}, {pipeline_mode = #tpu.pipeline_mode<synchronous>, transform_indices = @transform_11, window_bounds = array<i64: 1, 32>}, {pipeline_mode = #tpu.pipeline_mode<synchronous>, transform_indices = @transform_12, window_bounds = array<i64: 1, 32>}, {pipeline_mode = #tpu.pipeline_mode<synchronous>, transform_indices = @transform_13, window_bounds = array<i64: 32, 64>}, {pipeline_mode = #tpu.pipeline_mode<synchronous>, transform_indices = @transform_14, window_bounds = array<i64: 1, 64>}, {pipeline_mode = #tpu.pipeline_mode<synchronous>, transform_indices = @transform_15, window_bounds = array<i64: 64, 32>}, {pipeline_mode = #tpu.pipeline_mode<synchronous>, transform_indices = @transform_16, window_bounds = array<i64: 1, 32>}, {pipeline_mode = #tpu.pipeline_mode<synchronous>, transform_indices = @transform_17, window_bounds = array<i64: 1, 32>}, {pipeline_mode = #tpu.pipeline_mode<synchronous>, transform_indices = @transform_18, window_bounds = array<i64: 1, 32>}, {transform_indices = @transform_19, window_bounds = array<i64: 16, 32>}]} {
    %c0 = arith.constant 0 : index
    %c0_0 = arith.constant 0 : index
    %0 = vector.load %arg1[%c0, %c0_0] : memref<16x32xf32, #tpu.memory_space<vmem>>, vector<16x32xf32>
    %c0_1 = arith.constant 0 : index
    %c0_2 = arith.constant 0 : index
    %1 = vector.load %arg2[%c0_1, %c0_2] : memref<16x32xf32, #tpu.memory_space<vmem>>, vector<16x32xf32>
    %c0_3 = arith.constant 0 : index
    %c0_4 = arith.constant 0 : index
    %2 = vector.load %arg3[%c0_3, %c0_4] : memref<16x32xf32, #tpu.memory_space<vmem>>, vector<16x32xf32>
    %c0_5 = arith.constant 0 : index
    %c0_6 = arith.constant 0 : index
    %3 = vector.load %arg4[%c0_5, %c0_6] : memref<32x32xf32, #tpu.memory_space<vmem>>, vector<32x32xf32>
    %cst = arith.constant dense<0.000000e+00> : vector<16x32xf32>
    %4 = tpu.matmul %0, %3, %cst {dimension_numbers = #tpu.dot_dimension_numbers<[1], [0], [0], [1], [0, 0, 1, 1], [], []>} : vector<16x32xf32>, vector<32x32xf32>, vector<16x32xf32> -> vector<16x32xf32>
    %c0_7 = arith.constant 0 : index
    %c0_8 = arith.constant 0 : index
    %5 = vector.load %arg5[%c0_7, %c0_8] : memref<1x32xf32, #tpu.memory_space<vmem>>, vector<1x32xf32>
    %6 = vector.broadcast %5 : vector<1x32xf32> to vector<16x32xf32>
    %7 = arith.addf %4, %6 : vector<16x32xf32>
    %c0_9 = arith.constant 0 : index
    %c0_10 = arith.constant 0 : index
    %8 = vector.load %arg6[%c0_9, %c0_10] : memref<32x32xf32, #tpu.memory_space<vmem>>, vector<32x32xf32>
    %cst_11 = arith.constant dense<0.000000e+00> : vector<16x32xf32>
    %9 = tpu.matmul %1, %8, %cst_11 {dimension_numbers = #tpu.dot_dimension_numbers<[1], [0], [0], [1], [0, 0, 1, 1], [], []>} : vector<16x32xf32>, vector<32x32xf32>, vector<16x32xf32> -> vector<16x32xf32>
    %c0_12 = arith.constant 0 : index
    %c0_13 = arith.constant 0 : index
    %10 = vector.load %arg7[%c0_12, %c0_13] : memref<1x32xf32, #tpu.memory_space<vmem>>, vector<1x32xf32>
    %11 = vector.broadcast %10 : vector<1x32xf32> to vector<16x32xf32>
    %12 = arith.addf %9, %11 : vector<16x32xf32>
    %c0_14 = arith.constant 0 : index
    %c0_15 = arith.constant 0 : index
    %13 = vector.load %arg8[%c0_14, %c0_15] : memref<32x32xf32, #tpu.memory_space<vmem>>, vector<32x32xf32>
    %cst_16 = arith.constant dense<0.000000e+00> : vector<16x32xf32>
    %14 = tpu.matmul %2, %13, %cst_16 {dimension_numbers = #tpu.dot_dimension_numbers<[1], [0], [0], [1], [0, 0, 1, 1], [], []>} : vector<16x32xf32>, vector<32x32xf32>, vector<16x32xf32> -> vector<16x32xf32>
    %c0_17 = arith.constant 0 : index
    %c0_18 = arith.constant 0 : index
    %15 = vector.load %arg9[%c0_17, %c0_18] : memref<1x32xf32, #tpu.memory_space<vmem>>, vector<1x32xf32>
    %16 = vector.broadcast %15 : vector<1x32xf32> to vector<16x32xf32>
    %17 = arith.addf %14, %16 : vector<16x32xf32>
    %18 = vector.extract_strided_slice %7 {offsets = [0, 0], sizes = [16, 8], strides = [1, 1]} : vector<16x32xf32> to vector<16x8xf32>
    %19 = vector.shape_cast %18 : vector<16x8xf32> to vector<2x8x8xf32>
    %20 = vector.extract_strided_slice %12 {offsets = [0, 0], sizes = [16, 8], strides = [1, 1]} : vector<16x32xf32> to vector<16x8xf32>
    %21 = vector.shape_cast %20 : vector<16x8xf32> to vector<2x8x8xf32>
    %22 = vector.extract_strided_slice %17 {offsets = [0, 0], sizes = [16, 8], strides = [1, 1]} : vector<16x32xf32> to vector<16x8xf32>
    %23 = vector.shape_cast %22 : vector<16x8xf32> to vector<2x8x8xf32>
    "tpu.trace_start"() <{level = 10 : i32, message = "bqd,bkd->bqk"}> : () -> ()
    %cst_19 = arith.constant dense<0.000000e+00> : vector<2x8x8xf32>
    %24 = tpu.matmul %19, %21, %cst_19 {dimension_numbers = #tpu.dot_dimension_numbers<[2], [2], [1], [1], [0, 0, 0, 1, 1, 1], [0], [0]>} : vector<2x8x8xf32>, vector<2x8x8xf32>, vector<2x8x8xf32> -> vector<2x8x8xf32>
    "tpu.trace_stop"() : () -> ()
    %cst_20 = arith.constant 0.353553385 : f32
    %25 = vector.broadcast %cst_20 : f32 to vector<2x8x8xf32>
    %26 = arith.mulf %24, %25 : vector<2x8x8xf32>
    %cst_21 = arith.constant dense<0xFF800000> : vector<2x8xf32>
    %27 = vector.multi_reduction <maximumf>, %26, %cst_21 [2] : vector<2x8x8xf32> to vector<2x8xf32>
    %28 = vector.shape_cast %27 : vector<2x8xf32> to vector<2x8x1xf32>
    %29 = vector.broadcast %28 : vector<2x8x1xf32> to vector<2x8x8xf32>
    %30 = arith.subf %26, %29 : vector<2x8x8xf32>
    %31 = math.exp %30 : vector<2x8x8xf32>
    %cst_22 = arith.constant dense<0.000000e+00> : vector<2x8xf32>
    %32 = vector.multi_reduction <add>, %31, %cst_22 [2] : vector<2x8x8xf32> to vector<2x8xf32>
    %33 = vector.shape_cast %32 : vector<2x8xf32> to vector<2x8x1xf32>
    %34 = tpu.reciprocal %33 {approx = true} : vector<2x8x1xf32> -> vector<2x8x1xf32>
    %35 = vector.broadcast %34 : vector<2x8x1xf32> to vector<2x8x8xf32>
    %36 = arith.mulf %31, %35 : vector<2x8x8xf32>
    "tpu.trace_start"() <{level = 10 : i32, message = "bqk,bkd->bqd"}> : () -> ()
    %cst_23 = arith.constant dense<0.000000e+00> : vector<2x8x8xf32>
    %37 = tpu.matmul %36, %23, %cst_23 {dimension_numbers = #tpu.dot_dimension_numbers<[2], [1], [1], [2], [0, 0, 0, 1, 1, 2], [0], [0]>} : vector<2x8x8xf32>, vector<2x8x8xf32>, vector<2x8x8xf32> -> vector<2x8x8xf32>
    "tpu.trace_stop"() : () -> ()
    %38 = vector.shape_cast %37 : vector<2x8x8xf32> to vector<16x8xf32>
    %39 = vector.extract_strided_slice %7 {offsets = [0, 8], sizes = [16, 8], strides = [1, 1]} : vector<16x32xf32> to vector<16x8xf32>
    %40 = vector.shape_cast %39 : vector<16x8xf32> to vector<2x8x8xf32>
    %41 = vector.extract_strided_slice %12 {offsets = [0, 8], sizes = [16, 8], strides = [1, 1]} : vector<16x32xf32> to vector<16x8xf32>
    %42 = vector.shape_cast %41 : vector<16x8xf32> to vector<2x8x8xf32>
    %43 = vector.extract_strided_slice %17 {offsets = [0, 8], sizes = [16, 8], strides = [1, 1]} : vector<16x32xf32> to vector<16x8xf32>
    %44 = vector.shape_cast %43 : vector<16x8xf32> to vector<2x8x8xf32>
    "tpu.trace_start"() <{level = 10 : i32, message = "bqd,bkd->bqk"}> : () -> ()
    %cst_24 = arith.constant dense<0.000000e+00> : vector<2x8x8xf32>
    %45 = tpu.matmul %40, %42, %cst_24 {dimension_numbers = #tpu.dot_dimension_numbers<[2], [2], [1], [1], [0, 0, 0, 1, 1, 1], [0], [0]>} : vector<2x8x8xf32>, vector<2x8x8xf32>, vector<2x8x8xf32> -> vector<2x8x8xf32>
    "tpu.trace_stop"() : () -> ()
    %cst_25 = arith.constant 0.353553385 : f32
    %46 = vector.broadcast %cst_25 : f32 to vector<2x8x8xf32>
    %47 = arith.mulf %45, %46 : vector<2x8x8xf32>
    %cst_26 = arith.constant dense<0xFF800000> : vector<2x8xf32>
    %48 = vector.multi_reduction <maximumf>, %47, %cst_26 [2] : vector<2x8x8xf32> to vector<2x8xf32>
    %49 = vector.shape_cast %48 : vector<2x8xf32> to vector<2x8x1xf32>
    %50 = vector.broadcast %49 : vector<2x8x1xf32> to vector<2x8x8xf32>
    %51 = arith.subf %47, %50 : vector<2x8x8xf32>
    %52 = math.exp %51 : vector<2x8x8xf32>
    %cst_27 = arith.constant dense<0.000000e+00> : vector<2x8xf32>
    %53 = vector.multi_reduction <add>, %52, %cst_27 [2] : vector<2x8x8xf32> to vector<2x8xf32>
    %54 = vector.shape_cast %53 : vector<2x8xf32> to vector<2x8x1xf32>
    %55 = tpu.reciprocal %54 {approx = true} : vector<2x8x1xf32> -> vector<2x8x1xf32>
    %56 = vector.broadcast %55 : vector<2x8x1xf32> to vector<2x8x8xf32>
    %57 = arith.mulf %52, %56 : vector<2x8x8xf32>
    "tpu.trace_start"() <{level = 10 : i32, message = "bqk,bkd->bqd"}> : () -> ()
    %cst_28 = arith.constant dense<0.000000e+00> : vector<2x8x8xf32>
    %58 = tpu.matmul %57, %44, %cst_28 {dimension_numbers = #tpu.dot_dimension_numbers<[2], [1], [1], [2], [0, 0, 0, 1, 1, 2], [0], [0]>} : vector<2x8x8xf32>, vector<2x8x8xf32>, vector<2x8x8xf32> -> vector<2x8x8xf32>
    "tpu.trace_stop"() : () -> ()
    %59 = vector.shape_cast %58 : vector<2x8x8xf32> to vector<16x8xf32>
    %60 = vector.extract_strided_slice %7 {offsets = [0, 16], sizes = [16, 8], strides = [1, 1]} : vector<16x32xf32> to vector<16x8xf32>
    %61 = vector.shape_cast %60 : vector<16x8xf32> to vector<2x8x8xf32>
    %62 = vector.extract_strided_slice %12 {offsets = [0, 16], sizes = [16, 8], strides = [1, 1]} : vector<16x32xf32> to vector<16x8xf32>
    %63 = vector.shape_cast %62 : vector<16x8xf32> to vector<2x8x8xf32>
    %64 = vector.extract_strided_slice %17 {offsets = [0, 16], sizes = [16, 8], strides = [1, 1]} : vector<16x32xf32> to vector<16x8xf32>
    %65 = vector.shape_cast %64 : vector<16x8xf32> to vector<2x8x8xf32>
    "tpu.trace_start"() <{level = 10 : i32, message = "bqd,bkd->bqk"}> : () -> ()
    %cst_29 = arith.constant dense<0.000000e+00> : vector<2x8x8xf32>
    %66 = tpu.matmul %61, %63, %cst_29 {dimension_numbers = #tpu.dot_dimension_numbers<[2], [2], [1], [1], [0, 0, 0, 1, 1, 1], [0], [0]>} : vector<2x8x8xf32>, vector<2x8x8xf32>, vector<2x8x8xf32> -> vector<2x8x8xf32>
    "tpu.trace_stop"() : () -> ()
    %cst_30 = arith.constant 0.353553385 : f32
    %67 = vector.broadcast %cst_30 : f32 to vector<2x8x8xf32>
    %68 = arith.mulf %66, %67 : vector<2x8x8xf32>
    %cst_31 = arith.constant dense<0xFF800000> : vector<2x8xf32>
    %69 = vector.multi_reduction <maximumf>, %68, %cst_31 [2] : vector<2x8x8xf32> to vector<2x8xf32>
    %70 = vector.shape_cast %69 : vector<2x8xf32> to vector<2x8x1xf32>
    %71 = vector.broadcast %70 : vector<2x8x1xf32> to vector<2x8x8xf32>
    %72 = arith.subf %68, %71 : vector<2x8x8xf32>
    %73 = math.exp %72 : vector<2x8x8xf32>
    %cst_32 = arith.constant dense<0.000000e+00> : vector<2x8xf32>
    %74 = vector.multi_reduction <add>, %73, %cst_32 [2] : vector<2x8x8xf32> to vector<2x8xf32>
    %75 = vector.shape_cast %74 : vector<2x8xf32> to vector<2x8x1xf32>
    %76 = tpu.reciprocal %75 {approx = true} : vector<2x8x1xf32> -> vector<2x8x1xf32>
    %77 = vector.broadcast %76 : vector<2x8x1xf32> to vector<2x8x8xf32>
    %78 = arith.mulf %73, %77 : vector<2x8x8xf32>
    "tpu.trace_start"() <{level = 10 : i32, message = "bqk,bkd->bqd"}> : () -> ()
    %cst_33 = arith.constant dense<0.000000e+00> : vector<2x8x8xf32>
    %79 = tpu.matmul %78, %65, %cst_33 {dimension_numbers = #tpu.dot_dimension_numbers<[2], [1], [1], [2], [0, 0, 0, 1, 1, 2], [0], [0]>} : vector<2x8x8xf32>, vector<2x8x8xf32>, vector<2x8x8xf32> -> vector<2x8x8xf32>
    "tpu.trace_stop"() : () -> ()
    %80 = vector.shape_cast %79 : vector<2x8x8xf32> to vector<16x8xf32>
    %81 = vector.extract_strided_slice %7 {offsets = [0, 24], sizes = [16, 8], strides = [1, 1]} : vector<16x32xf32> to vector<16x8xf32>
    %82 = vector.shape_cast %81 : vector<16x8xf32> to vector<2x8x8xf32>
    %83 = vector.extract_strided_slice %12 {offsets = [0, 24], sizes = [16, 8], strides = [1, 1]} : vector<16x32xf32> to vector<16x8xf32>
    %84 = vector.shape_cast %83 : vector<16x8xf32> to vector<2x8x8xf32>
    %85 = vector.extract_strided_slice %17 {offsets = [0, 24], sizes = [16, 8], strides = [1, 1]} : vector<16x32xf32> to vector<16x8xf32>
    %86 = vector.shape_cast %85 : vector<16x8xf32> to vector<2x8x8xf32>
    "tpu.trace_start"() <{level = 10 : i32, message = "bqd,bkd->bqk"}> : () -> ()
    %cst_34 = arith.constant dense<0.000000e+00> : vector<2x8x8xf32>
    %87 = tpu.matmul %82, %84, %cst_34 {dimension_numbers = #tpu.dot_dimension_numbers<[2], [2], [1], [1], [0, 0, 0, 1, 1, 1], [0], [0]>} : vector<2x8x8xf32>, vector<2x8x8xf32>, vector<2x8x8xf32> -> vector<2x8x8xf32>
    "tpu.trace_stop"() : () -> ()
    %cst_35 = arith.constant 0.353553385 : f32
    %88 = vector.broadcast %cst_35 : f32 to vector<2x8x8xf32>
    %89 = arith.mulf %87, %88 : vector<2x8x8xf32>
    %cst_36 = arith.constant dense<0xFF800000> : vector<2x8xf32>
    %90 = vector.multi_reduction <maximumf>, %89, %cst_36 [2] : vector<2x8x8xf32> to vector<2x8xf32>
    %91 = vector.shape_cast %90 : vector<2x8xf32> to vector<2x8x1xf32>
    %92 = vector.broadcast %91 : vector<2x8x1xf32> to vector<2x8x8xf32>
    %93 = arith.subf %89, %92 : vector<2x8x8xf32>
    %94 = math.exp %93 : vector<2x8x8xf32>
    %cst_37 = arith.constant dense<0.000000e+00> : vector<2x8xf32>
    %95 = vector.multi_reduction <add>, %94, %cst_37 [2] : vector<2x8x8xf32> to vector<2x8xf32>
    %96 = vector.shape_cast %95 : vector<2x8xf32> to vector<2x8x1xf32>
    %97 = tpu.reciprocal %96 {approx = true} : vector<2x8x1xf32> -> vector<2x8x1xf32>
    %98 = vector.broadcast %97 : vector<2x8x1xf32> to vector<2x8x8xf32>
    %99 = arith.mulf %94, %98 : vector<2x8x8xf32>
    "tpu.trace_start"() <{level = 10 : i32, message = "bqk,bkd->bqd"}> : () -> ()
    %cst_38 = arith.constant dense<0.000000e+00> : vector<2x8x8xf32>
    %100 = tpu.matmul %99, %86, %cst_38 {dimension_numbers = #tpu.dot_dimension_numbers<[2], [1], [1], [2], [0, 0, 0, 1, 1, 2], [0], [0]>} : vector<2x8x8xf32>, vector<2x8x8xf32>, vector<2x8x8xf32> -> vector<2x8x8xf32>
    "tpu.trace_stop"() : () -> ()
    %101 = vector.shape_cast %100 : vector<2x8x8xf32> to vector<16x8xf32>
    %102 = tpu.concatenate %38, %59, %80, %101 in 1 : vector<16x8xf32>, vector<16x8xf32>, vector<16x8xf32>, vector<16x8xf32> -> vector<16x32xf32>
    %c0_39 = arith.constant 0 : index
    %c0_40 = arith.constant 0 : index
    %103 = vector.load %arg10[%c0_39, %c0_40] : memref<32x32xf32, #tpu.memory_space<vmem>>, vector<32x32xf32>
    %cst_41 = arith.constant dense<0.000000e+00> : vector<16x32xf32>
    %104 = tpu.matmul %102, %103, %cst_41 {dimension_numbers = #tpu.dot_dimension_numbers<[1], [0], [0], [1], [0, 0, 1, 1], [], []>} : vector<16x32xf32>, vector<32x32xf32>, vector<16x32xf32> -> vector<16x32xf32>
    %c0_42 = arith.constant 0 : index
    %c0_43 = arith.constant 0 : index
    %105 = vector.load %arg11[%c0_42, %c0_43] : memref<1x32xf32, #tpu.memory_space<vmem>>, vector<1x32xf32>
    %106 = vector.broadcast %105 : vector<1x32xf32> to vector<16x32xf32>
    %107 = arith.addf %104, %106 : vector<16x32xf32>
    %108 = arith.addf %0, %107 : vector<16x32xf32>
    %c0_44 = arith.constant 0 : index
    %c0_45 = arith.constant 0 : index
    %109 = vector.load %arg12[%c0_44, %c0_45] : memref<1x32xf32, #tpu.memory_space<vmem>>, vector<1x32xf32>
    %c0_46 = arith.constant 0 : index
    %c0_47 = arith.constant 0 : index
    %110 = vector.load %arg13[%c0_46, %c0_47] : memref<1x32xf32, #tpu.memory_space<vmem>>, vector<1x32xf32>
    %cst_48 = arith.constant dense<0.000000e+00> : vector<16xf32>
    %111 = vector.multi_reduction <add>, %108, %cst_48 [1] : vector<16x32xf32> to vector<16xf32>
    %112 = vector.shape_cast %111 : vector<16xf32> to vector<16x1xf32>
    %cst_49 = arith.constant 3.200000e+01 : f32
    %113 = vector.broadcast %cst_49 : f32 to vector<16x1xf32>
    %114 = arith.divf %112, %113 : vector<16x1xf32>
    %115 = vector.broadcast %114 : vector<16x1xf32> to vector<16x32xf32>
    %116 = arith.subf %108, %115 : vector<16x32xf32>
    %117 = arith.mulf %116, %116 : vector<16x32xf32>
    %cst_50 = arith.constant dense<0.000000e+00> : vector<16xf32>
    %118 = vector.multi_reduction <add>, %117, %cst_50 [1] : vector<16x32xf32> to vector<16xf32>
    %119 = vector.shape_cast %118 : vector<16xf32> to vector<16x1xf32>
    %cst_51 = arith.constant 3.200000e+01 : f32
    %120 = vector.broadcast %cst_51 : f32 to vector<16x1xf32>
    %121 = arith.divf %119, %120 : vector<16x1xf32>
    %cst_52 = arith.constant 9.99999974E-6 : f32
    %122 = vector.broadcast %cst_52 : f32 to vector<16x1xf32>
    %123 = arith.addf %121, %122 : vector<16x1xf32>
    %124 = math.rsqrt %123 : vector<16x1xf32>
    %125 = vector.broadcast %124 : vector<16x1xf32> to vector<16x32xf32>
    %126 = arith.mulf %116, %125 : vector<16x32xf32>
    %127 = vector.broadcast %109 : vector<1x32xf32> to vector<16x32xf32>
    %128 = arith.mulf %126, %127 : vector<16x32xf32>
    %129 = vector.broadcast %110 : vector<1x32xf32> to vector<16x32xf32>
    %130 = arith.addf %128, %129 : vector<16x32xf32>
    %c0_53 = arith.constant 0 : index
    %c0_54 = arith.constant 0 : index
    %131 = vector.load %arg14[%c0_53, %c0_54] : memref<32x64xf32, #tpu.memory_space<vmem>>, vector<32x64xf32>
    %cst_55 = arith.constant dense<0.000000e+00> : vector<16x64xf32>
    %132 = tpu.matmul %130, %131, %cst_55 {dimension_numbers = #tpu.dot_dimension_numbers<[1], [0], [0], [1], [0, 0, 1, 1], [], []>} : vector<16x32xf32>, vector<32x64xf32>, vector<16x64xf32> -> vector<16x64xf32>
    %c0_56 = arith.constant 0 : index
    %c0_57 = arith.constant 0 : index
    %133 = vector.load %arg15[%c0_56, %c0_57] : memref<1x64xf32, #tpu.memory_space<vmem>>, vector<1x64xf32>
    %134 = vector.broadcast %133 : vector<1x64xf32> to vector<16x64xf32>
    %135 = arith.addf %132, %134 : vector<16x64xf32>
    %cst_58 = arith.constant 0.000000e+00 : f32
    %136 = vector.broadcast %cst_58 : f32 to vector<16x64xf32>
    %137 = arith.maximumf %135, %136 : vector<16x64xf32>
    %c0_59 = arith.constant 0 : index
    %c0_60 = arith.constant 0 : index
    %138 = vector.load %arg16[%c0_59, %c0_60] : memref<64x32xf32, #tpu.memory_space<vmem>>, vector<64x32xf32>
    %cst_61 = arith.constant dense<0.000000e+00> : vector<16x32xf32>
    %139 = tpu.matmul %137, %138, %cst_61 {dimension_numbers = #tpu.dot_dimension_numbers<[1], [0], [0], [1], [0, 0, 1, 1], [], []>} : vector<16x64xf32>, vector<64x32xf32>, vector<16x32xf32> -> vector<16x32xf32>
    %c0_62 = arith.constant 0 : index
    %c0_63 = arith.constant 0 : index
    %140 = vector.load %arg17[%c0_62, %c0_63] : memref<1x32xf32, #tpu.memory_space<vmem>>, vector<1x32xf32>
    %141 = vector.broadcast %140 : vector<1x32xf32> to vector<16x32xf32>
    %142 = arith.addf %139, %141 : vector<16x32xf32>
    %143 = arith.addf %130, %142 : vector<16x32xf32>
    %c0_64 = arith.constant 0 : index
    %c0_65 = arith.constant 0 : index
    %144 = vector.load %arg18[%c0_64, %c0_65] : memref<1x32xf32, #tpu.memory_space<vmem>>, vector<1x32xf32>
    %c0_66 = arith.constant 0 : index
    %c0_67 = arith.constant 0 : index
    %145 = vector.load %arg19[%c0_66, %c0_67] : memref<1x32xf32, #tpu.memory_space<vmem>>, vector<1x32xf32>
    %cst_68 = arith.constant dense<0.000000e+00> : vector<16xf32>
    %146 = vector.multi_reduction <add>, %143, %cst_68 [1] : vector<16x32xf32> to vector<16xf32>
    %147 = vector.shape_cast %146 : vector<16xf32> to vector<16x1xf32>
    %cst_69 = arith.constant 3.200000e+01 : f32
    %148 = vector.broadcast %cst_69 : f32 to vector<16x1xf32>
    %149 = arith.divf %147, %148 : vector<16x1xf32>
    %150 = vector.broadcast %149 : vector<16x1xf32> to vector<16x32xf32>
    %151 = arith.subf %143, %150 : vector<16x32xf32>
    %152 = arith.mulf %151, %151 : vector<16x32xf32>
    %cst_70 = arith.constant dense<0.000000e+00> : vector<16xf32>
    %153 = vector.multi_reduction <add>, %152, %cst_70 [1] : vector<16x32xf32> to vector<16xf32>
    %154 = vector.shape_cast %153 : vector<16xf32> to vector<16x1xf32>
    %cst_71 = arith.constant 3.200000e+01 : f32
    %155 = vector.broadcast %cst_71 : f32 to vector<16x1xf32>
    %156 = arith.divf %154, %155 : vector<16x1xf32>
    %cst_72 = arith.constant 9.99999974E-6 : f32
    %157 = vector.broadcast %cst_72 : f32 to vector<16x1xf32>
    %158 = arith.addf %156, %157 : vector<16x1xf32>
    %159 = math.rsqrt %158 : vector<16x1xf32>
    %160 = vector.broadcast %159 : vector<16x1xf32> to vector<16x32xf32>
    %161 = arith.mulf %151, %160 : vector<16x32xf32>
    %162 = vector.broadcast %144 : vector<1x32xf32> to vector<16x32xf32>
    %163 = arith.mulf %161, %162 : vector<16x32xf32>
    %164 = vector.broadcast %145 : vector<1x32xf32> to vector<16x32xf32>
    %165 = arith.addf %163, %164 : vector<16x32xf32>
    %c0_73 = arith.constant 0 : index
    %c0_74 = arith.constant 0 : index
    %166 = vector.load %arg20[%c0_73, %c0_74] : memref<16x32xf32, #tpu.memory_space<vmem>>, vector<16x32xf32>
    tpu.vector_store %arg20[%c0_73, %c0_74], %165 {strides = array<i32>} : memref<16x32xf32, #tpu.memory_space<vmem>>, vector<16x32xf32>,
    return
  }
  func.func @transform_0(%arg0: i32) -> (i32, i32) {
    %c0_i32 = arith.constant 0 : i32
    %c0_i32_0 = arith.constant 0 : i32
    return %arg0, %c0_i32 : i32, i32
  }
  func.func @transform_1(%arg0: i32) -> (i32, i32) {
    %c0_i32 = arith.constant 0 : i32
    %c0_i32_0 = arith.constant 0 : i32
    return %arg0, %c0_i32 : i32, i32
  }
  func.func @transform_2(%arg0: i32) -> (i32, i32) {
    %c0_i32 = arith.constant 0 : i32
    %c0_i32_0 = arith.constant 0 : i32
    return %arg0, %c0_i32 : i32, i32
  }
  func.func @transform_3(%arg0: i32) -> (i32, i32) {
    %c0_i32 = arith.constant 0 : i32
    %c0_i32_0 = arith.constant 0 : i32
    %c0_i32_1 = arith.constant 0 : i32
    return %c0_i32, %c0_i32_0 : i32, i32
  }
  func.func @transform_4(%arg0: i32) -> (i32, i32) {
    %c0_i32 = arith.constant 0 : i32
    %c0_i32_0 = arith.constant 0 : i32
    %c0_i32_1 = arith.constant 0 : i32
    return %c0_i32, %c0_i32_0 : i32, i32
  }
  func.func @transform_5(%arg0: i32) -> (i32, i32) {
    %c0_i32 = arith.constant 0 : i32
    %c0_i32_0 = arith.constant 0 : i32
    %c0_i32_1 = arith.constant 0 : i32
    return %c0_i32, %c0_i32_0 : i32, i32
  }
  func.func @transform_6(%arg0: i32) -> (i32, i32) {
    %c0_i32 = arith.constant 0 : i32
    %c0_i32_0 = arith.constant 0 : i32
    %c0_i32_1 = arith.constant 0 : i32
    return %c0_i32, %c0_i32_0 : i32, i32
  }
  func.func @transform_7(%arg0: i32) -> (i32, i32) {
    %c0_i32 = arith.constant 0 : i32
    %c0_i32_0 = arith.constant 0 : i32
    %c0_i32_1 = arith.constant 0 : i32
    return %c0_i32, %c0_i32_0 : i32, i32
  }
  func.func @transform_8(%arg0: i32) -> (i32, i32) {
    %c0_i32 = arith.constant 0 : i32
    %c0_i32_0 = arith.constant 0 : i32
    %c0_i32_1 = arith.constant 0 : i32
    return %c0_i32, %c0_i32_0 : i32, i32
  }
  func.func @transform_9(%arg0: i32) -> (i32, i32) {
    %c0_i32 = arith.constant 0 : i32
    %c0_i32_0 = arith.constant 0 : i32
    %c0_i32_1 = arith.constant 0 : i32
    return %c0_i32, %c0_i32_0 : i32, i32
  }
  func.func @transform_10(%arg0: i32) -> (i32, i32) {
    %c0_i32 = arith.constant 0 : i32
    %c0_i32_0 = arith.constant 0 : i32
    %c0_i32_1 = arith.constant 0 : i32
    return %c0_i32, %c0_i32_0 : i32, i32
  }
  func.func @transform_11(%arg0: i32) -> (i32, i32) {
    %c0_i32 = arith.constant 0 : i32
    %c0_i32_0 = arith.constant 0 : i32
    %c0_i32_1 = arith.constant 0 : i32
    return %c0_i32, %c0_i32_0 : i32, i32
  }
  func.func @transform_12(%arg0: i32) -> (i32, i32) {
    %c0_i32 = arith.constant 0 : i32
    %c0_i32_0 = arith.constant 0 : i32
    %c0_i32_1 = arith.constant 0 : i32
    return %c0_i32, %c0_i32_0 : i32, i32
  }
  func.func @transform_13(%arg0: i32) -> (i32, i32) {
    %c0_i32 = arith.constant 0 : i32
    %c0_i32_0 = arith.constant 0 : i32
    %c0_i32_1 = arith.constant 0 : i32
    return %c0_i32, %c0_i32_0 : i32, i32
  }
  func.func @transform_14(%arg0: i32) -> (i32, i32) {
    %c0_i32 = arith.constant 0 : i32
    %c0_i32_0 = arith.constant 0 : i32
    %c0_i32_1 = arith.constant 0 : i32
    return %c0_i32, %c0_i32_0 : i32, i32
  }
  func.func @transform_15(%arg0: i32) -> (i32, i32) {
    %c0_i32 = arith.constant 0 : i32
    %c0_i32_0 = arith.constant 0 : i32
    %c0_i32_1 = arith.constant 0 : i32
    return %c0_i32, %c0_i32_0 : i32, i32
  }
  func.func @transform_16(%arg0: i32) -> (i32, i32) {
    %c0_i32 = arith.constant 0 : i32
    %c0_i32_0 = arith.constant 0 : i32
    %c0_i32_1 = arith.constant 0 : i32
    return %c0_i32, %c0_i32_0 : i32, i32
  }
  func.func @transform_17(%arg0: i32) -> (i32, i32) {
    %c0_i32 = arith.constant 0 : i32
    %c0_i32_0 = arith.constant 0 : i32
    %c0_i32_1 = arith.constant 0 : i32
    return %c0_i32, %c0_i32_0 : i32, i32
  }
  func.func @transform_18(%arg0: i32) -> (i32, i32) {
    %c0_i32 = arith.constant 0 : i32
    %c0_i32_0 = arith.constant 0 : i32
    %c0_i32_1 = arith.constant 0 : i32
    return %c0_i32, %c0_i32_0 : i32, i32
  }
  func.func @transform_19(%arg0: i32) -> (i32, i32) {
    %c0_i32 = arith.constant 0 : i32
    %c0_i32_0 = arith.constant 0 : i32
    return %arg0, %c0_i32 : i32, i32
  }
}

</mosaic_0001>

<bundles_post_ra>
// kernel: tpu_custom_call.1
= control target key start
LH: loop header
LB: loop body
LE: loop exit
PB: predicated region body
PF: predicated region fallthrough
CT: control target
= control target key end

     0   :  { %s3046_s0 = inlined_call_operand.hbm [shape: f32[16,32], index: 0, kind: input, shape index: {}]   ;;  %s3047_s1 = inlined_call_operand.hbm [shape: f32[16,32], index: 1, kind: input, shape index: {}]   ;;  %s3048_s2 = inlined_call_operand.hbm [shape: f32[16,32], index: 2, kind: input, shape index: {}]   ;;  %s3049_s3 = inlined_call_operand.vmem [shape: f32[32,32], index: 3, kind: input, shape index: {}]   ;;  %s3050_s4 = inlined_call_operand.vmem [shape: f32[1,32], index: 4, kind: input, shape index: {}]   ;;  %s3051_s5 = inlined_call_operand.vmem [shape: f32[32,32], index: 5, kind: input, shape index: {}]   ;;  %s3052_s6 = inlined_call_operand.vmem [shape: f32[1,32], index: 6, kind: input, shape index: {}]   ;;  %s3053_s7 = inlined_call_operand.vmem [shape: f32[32,32], index: 7, kind: input, shape index: {}]   ;;  %s3054_s8 = inlined_call_operand.vmem [shape: f32[1,32], index: 8, kind: input, shape index: {}]   ;;  %s3055_s9 = inlined_call_operand.hbm [shape: f32[32,32], index: 9, kind: input, shape index: {}]   ;;  %s3056_s10 = inlined_call_operand.vmem [shape: f32[1,32], index: 10, kind: input, shape index: {}]   ;;  %s3057_s11 = inlined_call_operand.vmem [shape: f32[1,32], index: 11, kind: input, shape index: {}]   ;;  %s3058_s12 = inlined_call_operand.vmem [shape: f32[1,32], index: 12, kind: input, shape index: {}]   ;;  %s3059_s13 = inlined_call_operand.hbm [shape: f32[32,64], index: 13, kind: input, shape index: {}]   ;;  %s3060_s14 = inlined_call_operand.vmem [shape: f32[1,64], index: 14, kind: input, shape index: {}]   ;;  %s3061_s15 = inlined_call_operand.vmem [shape: f32[64,32], index: 15, kind: input, shape index: {}]   ;;  %s3062_s16 = inlined_call_operand.vmem [shape: f32[1,32], index: 16, kind: input, shape index: {}]   ;;  %s3063_s17 = inlined_call_operand.vmem [shape: f32[1,32], index: 17, kind: input, shape index: {}]   ;;  %s3064_s18 = inlined_call_operand.vmem [shape: f32[1,32], index: 18, kind: input, shape index: {}]   ;;  %s3065_s19 = inlined_call_operand.hbm [shape: f32[16,32], index: 19, kind: output, shape index: {}]  }
   0x1   :  { %3067 = sst [smem:[#allocation16_spill]] %s3046_s0 }
   0x2   :  { %3068 = sst [smem:[#allocation17_spill]] %s3047_s1 }
   0x3   :  { %3069 = sst [smem:[#allocation18_spill]] %s3048_s2 }
   0x4   :  { %3070 = sst [smem:[#allocation19_spill]] %s3049_s3 }
   0x5   :  { %24 = vsyncpa [#allocation3], 0 }
   0x6   :  { %25 = vsyncpa [#allocation6], 0 }
   0x7   :  { %26 = vsyncpa [#allocation9], 0 }
   0x8   :  { %27 = vsyncpa [#allocation4], 0  ;;  %s2619_s0 = smov [#allocation5]   ;;  %s2620_s20 = smov [#allocation8]  }
   0x9   :  { %s45_s30 = sshll.u32 %s2619_s0, 4  ;;  %s81_s21 = sshll.u32 %s2620_s20, 4  ;;  %s46_s30 = int_to_ptr.vmem [resolvable:$true] %s45_s30  ;;  %s82_s21 = int_to_ptr.vmem [resolvable:$true] %s81_s21 }
   0xa   :  { %s2499_s1 = scalar_lea.vmem %s46_s30, 256  ;;  %p2504_p1 = scmp.lt.s32.totalorder %s46_s30, %s46_s30 }
   0xb   :  { %p2500_p0 = scmp.ne.s32.totalorder %s46_s30, %s2499_s1  ;;  %p2505_p2 = scmp.lt.s32.totalorder %s2499_s1, %s2499_s1 }
   0xd   :  { %p2506_p3 = por %p2505_p2, %p2504_p1 }
   0xf   :  { %p2507_p4 = pnand %p2506_p3, %p2500_p0 }
  0x11   :  { %2510 = shalt.err (!%p2507_p4)
}
  0x12   :  { %s2621_s22 = smov 128   ;;  %s2622_s2 = smov 8  }
  0x13   :  { %s3071_s25 = sld [smem:[#allocation17_spill]]  ;;  %s2519_s3 = scalar_lea.vmem %s82_s21, 512 }
  0x14   :  { %p2520_p5 = scmp.ne.s32.totalorder %s82_s21, %s2519_s3  ;;  %p2524_p6 = scmp.lt.s32.totalorder %s82_s21, %s82_s21 }
  0x15   :  { %p2525_p7 = scmp.lt.s32.totalorder %s2519_s3, %s2519_s3 }
  0x17   :  { %p2526_p8 = por %p2525_p7, %p2524_p6 }
  0x19   :  { %51 = dma.hbm_to_vmem [thread:$0]  %s3071_s25, 256, %s46_s30, [#allocation6], %s2621_s22, %s2621_s22, %s2622_s2  }
  0x1a   :  { %p2527_p9 = pnand %p2526_p8, %p2520_p5 }
  0x1c   :  { %2530 = shalt.err (!%p2527_p9)
}
  0x1d   :  { %87 = dma.hbm_to_vmem [thread:$0]  %s3055_s9, 512, %s82_s21, [#allocation9], %s2621_s22, %s2621_s22, %s2622_s2  }
  0x1e   :  { %s2623_s28 = smov [#allocation2]   ;;  %s2624_s0 = smov [#allocation7]  }
  0x1f   :  { %s33_s29 = sshll.u32 %s2623_s28, 4  ;;  %s57_s20 = sshll.u32 %s2624_s0, 4  ;;  %s34_s29 = int_to_ptr.vmem [resolvable:$true] %s33_s29  ;;  %s58_s20 = int_to_ptr.vmem [resolvable:$true] %s57_s20 }
  0x20   :  { %s2539_s30 = scalar_lea.vmem %s34_s29, 256  ;;  %p2544_p11 = scmp.lt.s32.totalorder %s34_s29, %s34_s29 }
  0x21   :  { %p2540_p10 = scmp.ne.s32.totalorder %s34_s29, %s2539_s30  ;;  %p2545_p12 = scmp.lt.s32.totalorder %s2539_s30, %s2539_s30 }
  0x23   :  { %p2546_p13 = por %p2545_p12, %p2544_p11 }
  0x25   :  { %p2547_p0 = pnand %p2546_p13, %p2540_p10 }
  0x27   :  { %2550 = shalt.err (!%p2547_p0)
}
  0x28   :  { %s3072_s24 = sld [smem:[#allocation16_spill]]  ;;  %s2559_s9 = scalar_lea.vmem %s58_s20, 256 }
  0x29   :  { %p2560_p1 = scmp.ne.s32.totalorder %s58_s20, %s2559_s9  ;;  %p2564_p2 = scmp.lt.s32.totalorder %s58_s20, %s58_s20 }
  0x2a   :  { %p2565_p3 = scmp.lt.s32.totalorder %s2559_s9, %s2559_s9 }
  0x2c   :  { %p2566_p4 = por %p2565_p3, %p2564_p2 }
  0x2e   :  { %39 = dma.hbm_to_vmem [thread:$0]  %s3072_s24, 256, %s34_s29, [#allocation3], %s2621_s22, %s2621_s22, %s2622_s2  }
  0x2f   :  { %p2567_p5 = pnand %p2566_p4, %p2560_p1 }
  0x31   :  { %2570 = shalt.err (!%p2567_p5)
}
  0x32   :  { %s3073_s3 = sld [smem:[#allocation18_spill]]  ;;  %s2625_s26 = smov [#allocation10]  }
  0x33   :  { %s99_s27 = sshll.u32 %s2625_s26, 4  ;;  %s100_s27 = int_to_ptr.vmem [resolvable:$true] %s99_s27 }
  0x34   :  { %s2579_s28 = scalar_lea.vmem %s100_s27, 512  ;;  %p2584_p7 = scmp.lt.s32.totalorder %s100_s27, %s100_s27 }
  0x35   :  { %p2580_p6 = scmp.ne.s32.totalorder %s100_s27, %s2579_s28  ;;  %p2585_p8 = scmp.lt.s32.totalorder %s2579_s28, %s2579_s28 }
  0x37   :  { %p2586_p9 = por %p2585_p8, %p2584_p7 }
  0x38   :  { %63 = dma.hbm_to_vmem [thread:$0]  %s3073_s3, 256, %s58_s20, [#allocation6], %s2621_s22, %s2621_s22, %s2622_s2  }
  0x39   :  { %p2587_p10 = pnand %p2586_p9, %p2580_p6 }
  0x3b   :  { %2590 = shalt.err (!%p2587_p10)
}
  0x3c   :  { %105 = dma.hbm_to_vmem [thread:$0]  %s3059_s13, 512, %s100_s27, [#allocation9], %s2621_s22, %s2621_s22, %s2622_s2  }
  0x3d   :  { %2611 = dma.done.wait [#allocation3], 256  }
  0x3e   :  { %2612 = vsyncadd [#allocation3], 4294967040 }
  0x3f   :  { %2613 = dma.done.wait [#allocation6], 512  }
  0x40   :  { %2614 = vsyncadd [#allocation6], 4294966784 }
  0x41   :  { %2615 = dma.done.wait [#allocation9], 1024  }
  0x42   :  { %2616 = vsyncadd [#allocation9], 4294966272  ;;  %vm148_vm0 = vcmask 261120   ;;  %s3074_s1 = sld [smem:[#allocation19_spill]]  ;;  %v2770_v2 = vld [vmem:[#allocation2] sm:$0xff]  ;;  %v2780_v5 = vld [vmem:[#allocation2 + $0x8] sm:$0xff] }
  0x43   :  { %2290 = vmatprep.mubr.msk.f32.mxu1 %vm148_vm0, %v2770_v2  ;;  %v233_v6 = vld [vmem:[%s3051_s5 + $0x18] sm:$0xff]  ;;  %v133_v7 = vld [vmem:[#allocation5] sm:$0xff]  ;;  %v231_v9 = vld [vmem:[%s3051_s5 + $0x8] sm:$0xff]  ;;  %v2626_v12 = vmov 0.0   ;;  %vm2627_vm1 = vmmov 0   ;;  %vm414_vm2 = vcmask 64512  }
  0x44   :  { %v232_v8 = vld [vmem:[%s3051_s5 + $0x10] sm:$0xff]  ;;  %v230_v10 = vld [vmem:[%s3051_s5] sm:$0xff]  ;;  %v134_v11 = vld [vmem:[#allocation5 + $0x8] sm:$0xff]  ;;  %s2628_s13 = smov 120   ;;  %s2630_s29 = smov 104   ;;  %vm1764_vm3 = vcmask 195584  }
  0x45   :  { %v2167_v15 = vld [vmem:[%s3052_s6] ss:$0 sm:$0xff]  ;;  %v325_v23 = vld [vmem:[%s3053_s7 + $0x18] sm:$0xff]  ;;  %v324_v24 = vld [vmem:[%s3053_s7 + $0x10] sm:$0xff]  ;;  %s2631_s0 = smov 16   ;;  %s2632_s20 = smov 24  }
  0x46   :  { %v2164_v18 = vld [vmem:[%s3050_s4] ss:$0 sm:$0xff]  ;;  %2304 = vmatprep.subr.mxu0 %v325_v23  ;;  %v323_v26 = vld [vmem:[%s3053_s7 + $0x8] sm:$0xff]  ;;  %vm1761_vm4 = vcmask 130048   ;;  %vm2015_vm5 = vcmask 523264   ;;  %s2633_s5 = smov [#allocation11]  }
  0x47   :  { %v135_v25 = vld [vmem:[#allocation7] sm:$0xff]  ;;  %2305 = vmatpush3.msra.mxu0 %v325_v23  ;;  %v136_v28 = vld [vmem:[#allocation7 + $0x8] sm:$0xff]  ;;  %s2150_s24 = sshll.u32 %s2633_s5, 4  ;;  %s2151_s24 = int_to_ptr.vmem [resolvable:$true] %s2150_s24 }
  0x48   :  { %v140_v0 = vld [vmem:[%s3074_s1 + $0x18] sm:$0xff]  ;;  %v139_v1 = vld [vmem:[%s3074_s1 + $0x10] sm:$0xff]  ;;  %v138_v3 = vld [vmem:[%s3074_s1 + $0x8] sm:$0xff]  ;;  %2312 = vmatprep.mubr.msk.f32.mxu0 %vm148_vm0, %v135_v25  ;;  %2306 = vmatprep.subr.mxu0 %v324_v24  ;;  %p2596_p12 = scmp.lt.s32.totalorder %s2151_s24, %s2151_s24 }
  0x49   :  { %2282 = vmatprep.subr.mxu1 %v140_v0  ;;  %v137_v4 = vld [vmem:[%s3074_s1] sm:$0xff]  ;;  %2307 = vmatpush3.msra.mxu0 %v324_v24 }
  0x4a   :  { %2283 = vmatpush3.msra.mxu1 %v140_v0  ;;  %v322_v27 = vld [vmem:[%s3053_s7] sm:$0xff]  ;;  %2308 = vmatprep.subr.mxu0 %v323_v26 }
  0x4b   :  { %2284 = vmatprep.subr.mxu1 %v139_v1  ;;  %2309 = vmatpush3.msra.mxu0 %v323_v26  ;;  %v2170_v48 = vld [vmem:[%s3054_s8] ss:$0 sm:$0xff]  ;;  %s2629_s8 = smov 112  }
  0x4c   :  { %2285 = vmatpush3.msra.mxu1 %v139_v1  ;;  %2310 = vmatprep.subr.mxu0 %v322_v27 }
  0x4d   :  { %2286 = vmatprep.subr.mxu1 %v138_v3  ;;  %2311 = vmatpush3.msra.mxu0 %v322_v27 }
  0x4e   :  { %2287 = vmatpush3.msra.mxu1 %v138_v3  ;;  %2313 = vmatmul.mubr.msk.f32.vlgmr.msra.gmra.mxu0 %vm148_vm0, %v136_v28 }
  0x4f   :  { %2288 = vmatprep.subr.mxu1 %v137_v4  ;;  %2325 = vmatprep.subr.mxu0 %v2626_v12 }
  0x50   :  { %2289 = vmatpush3.msra.mxu1 %v137_v4  ;;  %2327 = vmatprep.mubr.msk.f32.mxu0 %vm2627_vm1, %v2626_v12 }
  0x51   :  { %2291 = vmatmul.mubr.msk.f32.vlgmr.msra.gmra.mxu1 %vm148_vm0, %v2780_v5  ;;  %2293 = vmatprep.subr.mxu1 %v233_v6 }
  0x52   :  { %2294 = vmatpush3.msra.mxu1 %v233_v6  ;;  %2301 = vmatprep.mubr.msk.f32.mxu1 %vm148_vm0, %v133_v7 }
  0x53   :  { %2295 = vmatprep.subr.mxu1 %v232_v8 }
  0x54   :  { %2296 = vmatpush3.msra.mxu1 %v232_v8 }
  0x55   :  { %2297 = vmatprep.subr.mxu1 %v231_v9 }
  0x56   :  { %2298 = vmatpush3.msra.mxu1 %v231_v9 }
  0x57   :  { %2299 = vmatprep.subr.mxu1 %v230_v10 }
  0x58   :  { %2300 = vmatpush3.msra.mxu1 %v230_v10 }
  0x59   :  { %2302 = vmatmul.mubr.msk.f32.vlgmr.msra.gmra.mxu1 %vm148_vm0, %v134_v11  ;;  %2315 = vmatprep.subr.mxu1 %v2626_v12 }
  0x5a   :  { %2317 = vmatprep.mubr.msk.f32.mxu1 %vm2627_vm1, %v2626_v12 }
 0x10e   :  { %v2314_v47 = vpop.f32.mrf.mxu0 }
 0x10f   :  { %v2859_v49 = vadd.f32 %v2314_v47, %v2170_v48 }
 0x110   :  { %v405_v50 = vpop.f32.mrf.mxu0 }
 0x111   :  { %v2292_v13 = vpop.f32.mrf.mxu1  ;;  %v2862_v51 = vadd.f32 %v2170_v48, %v405_v50 }
 0x112   :  { %v2826_v22 = vadd.f32 %v2292_v13, %v2164_v18 }
 0x113   :  { %v221_v14 = vpop.f32.mrf.mxu1  ;;  %2326 = vmatpush3.msra.mxu0 %v2862_v51 }
 0x114   :  { %v2813_v21 = vadd.f32 %v2164_v18, %v221_v14  ;;  %2335 = vmatprep.subr.mxu0 %v2626_v12 }
 0x119   :  { %v2303_v16 = vpop.f32.mrf.mxu1 }
 0x11a   :  { %v2804_v17 = vadd.f32 %v2303_v16, %v2167_v15 }
 0x11b   :  { %v313_v19 = vpop.f32.mrf.mxu1 }
 0x11c   :  { %v2809_v20 = vadd.f32 %v2167_v15, %v313_v19  ;;  %817 = vrot.lane.b32.xlu1 %v2804_v17, %s2628_s13 }
 0x11e   :  { %2316 = vmatpush3.xpose.msk.msra.mxu1 %vm414_vm2, %v2809_v20 }
 0x11f   :  { %2320 = vmatprep.subr.mxu1 %v2626_v12 }
 0x120   :  { %737 = vrot.lane.b32.xlu1 %v2813_v21, %s2628_s13 }
 0x121   :  { %2318 = vmatmul.mubr.msk.f32.vlgmr.msra.gmra.mxu1 %vm414_vm2, %v2813_v21 }
 0x122   :  { %2321 = vmatpush3.xpose.msk.msra.mxu1 %vm414_vm2, %v2804_v17  ;;  %2322 = vmatprep.mubr.msk.f32.mxu1 %vm2627_vm1, %v2626_v12 }
 0x123   :  { %2330 = vmatprep.subr.mxu1 %v2626_v12 }
 0x125   :  { %2323 = vmatmul.mubr.msk.f32.vlgmr.msra.gmra.mxu1 %vm414_vm2, %v2826_v22 }
 0x126   :  { %2332 = vmatprep.mubr.msk.f32.mxu1 %vm2627_vm1, %v2626_v12  ;;  %2331 = vmatpush3.msra.mxu1 %v2859_v49 }
 0x127   :  { %2340 = vmatprep.subr.mxu1 %v2626_v12 }
 0x18e   :  { %v818_v52 = vpop.permute.xlu1 %817 }
 0x192   :  { %v738_v53 = vpop.permute.xlu1 %737 }
 0x1e1   :  { %v487_v29 = vpop.f32.mrf.mxu1 }
 0x1e2   :  { %v567_v30 = vmul.f32 0.35355338, %v487_v29 }
 0x1e3   :  { %v2319_v31 = vpop.f32.mrf.mxu1 }
 0x1e4   :  { %v569_v32 = vsel %vm414_vm2, %v567_v30, -inf }
 0x1e5   :  { %570 = vmax.xlane.f32.xlu0 %v569_v32  ;;  %v563_v33 = vpop.f32.mrf.mxu1 }
 0x1e6   :  { %v568_v34 = vmul.f32 0.35355338, %v563_v33 }
 0x1e7   :  { %v2324_v35 = vpop.f32.mrf.mxu1 }
 0x1e8   :  { %v572_v36 = vsel %vm414_vm2, %v568_v34, -inf }
 0x1e9   :  { %573 = vmax.xlane.f32.xlu0 %v572_v36 }
 0x1ff   :  { %739 = vrot.lane.b32.xlu0 %v2809_v20, %s2628_s13 }
 0x26e   :  { %v571_v37 = vpop.xlane.xlu0 %570 }
 0x26f   :  { %v575_v38 = vsub.f32 %v567_v30, %v571_v37 }
 0x271   :  { %v577_v39 = vmul.f32 1.442695, %v575_v38 }
 0x272   :  { %v574_v40 = vpop.xlane.xlu0 %573 }
 0x273   :  { %2451 = vpow2.f32 %v577_v39  ;;  %v576_v41 = vsub.f32 %v568_v34, %v574_v40 }
 0x275   :  { %v579_v42 = vmul.f32 1.442695, %v576_v41 }
 0x276   :  { %v740_v58 = vpop.permute.xlu0 %739 }
 0x277   :  { %2453 = vpow2.f32 %v579_v42 }
 0x280   :  { %v2452_v43 = vpop.eup %2451 }
 0x281   :  { %v581_v44 = vsel %vm414_vm2, %v2452_v43, 0.0 }
 0x282   :  { %582 = vadd.xlane.f32.xlu1 %v581_v44 }
 0x284   :  { %v2454_v45 = vpop.eup %2453 }
 0x285   :  { %v584_v46 = vsel %vm414_vm2, %v2454_v45, 0.0 }
 0x286   :  { %585 = vadd.xlane.f32.xlu1 %v584_v46 }
 0x297   :  { %815 = vrot.lane.b32.xlu1 %v2826_v22, %s2628_s13 }
 0x30b   :  { %v583_v54 = vpop.xlane.xlu1 %582 }
 0x30c   :  { %2455 = vrcp.f32 %v583_v54 }
 0x30f   :  { %v586_v55 = vpop.xlane.xlu1 %585 }
 0x310   :  { %2457 = vrcp.f32 %v586_v55 }
 0x313   :  { %v816_v61 = vpop.permute.xlu1 %815 }
 0x319   :  { %v2456_v56 = vpop.eup %2455 }
 0x31a   :  { %v589_v57 = vmul.f32 %v2456_v56, %v2452_v43 }
 0x31c   :  { %2328 = vmatmul.mubr.msk.f32.vlgmr.msra.gmra.mxu0 %vm414_vm2, %v589_v57 }
 0x31d   :  { %v2458_v59 = vpop.eup %2457  ;;  %2336 = vmatpush3.xpose.msk.msra.mxu0 %vm414_vm2, %v740_v58  ;;  %2337 = vmatprep.mubr.msk.f32.mxu0 %vm2627_vm1, %v2626_v12 }
 0x31e   :  { %v590_v60 = vmul.f32 %v2458_v59, %v2454_v45  ;;  %2345 = vmatprep.subr.mxu0 %v2626_v12 }
 0x320   :  { %2333 = vmatmul.mubr.msk.f32.vlgmr.msra.gmra.mxu1 %vm414_vm2, %v590_v60  ;;  %2338 = vmatmul.mubr.msk.f32.vlgmr.msra.gmra.mxu0 %vm414_vm2, %v738_v53 }
 0x321   :  { %2341 = vmatpush3.xpose.msk.msra.mxu1 %vm414_vm2, %v818_v52  ;;  %2342 = vmatprep.mubr.msk.f32.mxu1 %vm2627_vm1, %v2626_v12 }
 0x322   :  { %2350 = vmatprep.subr.mxu1 %v2626_v12  ;;  %2347 = vmatprep.mubr.msk.f32.mxu0 %vm2627_vm1, %v2626_v12 }
 0x324   :  { %2343 = vmatmul.mubr.msk.f32.vlgmr.msra.gmra.mxu1 %vm414_vm2, %v816_v61 }
 0x325   :  { %2352 = vmatprep.mubr.msk.f32.mxu1 %vm2627_vm1, %v2626_v12 }
 0x3dc   :  { %v2885_v62 = vpop.f32.mrf.mxu0 }
 0x3de   :  { %v2329_v63 = vpop.f32.mrf.mxu0 }
 0x3e0   :  { %v2887_v0 = vpop.f32.mrf.mxu1  ;;  %v811_v1 = vpop.f32.mrf.mxu0 }
 0x3e1   :  { %v893_v3 = vmul.f32 0.35355338, %v811_v1 }
 0x3e2   :  { %v2334_v4 = vpop.f32.mrf.mxu1  ;;  %v2339_v6 = vpop.f32.mrf.mxu0 }
 0x3e3   :  { %v895_v7 = vsel %vm414_vm2, %v893_v3, -inf }
 0x3e4   :  { %896 = vmax.xlane.f32.xlu0 %v895_v7  ;;  %v889_v8 = vpop.f32.mrf.mxu1 }
 0x3e5   :  { %v894_v9 = vmul.f32 0.35355338, %v889_v8 }
 0x3e6   :  { %v2344_v10 = vpop.f32.mrf.mxu1 }
 0x3e7   :  { %v898_v11 = vsel %vm414_vm2, %v894_v9, -inf }
 0x3e8   :  { %899 = vmax.xlane.f32.xlu1 %v898_v11 }
 0x3f9   :  { %995 = vrot.lane.b32.xlu1 %v2859_v49, %s2628_s13 }
 0x3fa   :  { %918 = vrot.lane.b32.xlu0 %v2862_v51, %s2628_s13  ;;  %s2591_s13 = scalar_lea.vmem %s2151_s24, 256 }
 0x3fb   :  { %p2592_p11 = scmp.ne.s32.totalorder %s2151_s24, %s2591_s13  ;;  %p2597_p13 = scmp.lt.s32.totalorder %s2591_s13, %s2591_s13 }
 0x3fd   :  { %1073 = vrot.lane.b32.xlu1 %v2809_v20, %s2629_s8  ;;  %p2598_p0 = por %p2597_p13, %p2596_p12 }
 0x3ff   :  { %p2599_p1 = pnand %p2598_p0, %p2592_p11 }
 0x401   :  { %1151 = vrot.lane.b32.xlu1 %v2804_v17, %s2629_s8 }
 0x405   :  { %1149 = vrot.lane.b32.xlu1 %v2826_v22, %s2629_s8 }
 0x46d   :  { %v897_v13 = vpop.xlane.xlu0 %896 }
 0x46e   :  { %v901_v14 = vsub.f32 %v893_v3, %v897_v13 }
 0x470   :  { %v903_v15 = vmul.f32 1.442695, %v901_v14 }
 0x471   :  { %v919_v16 = vpop.permute.xlu0 %918  ;;  %v900_v18 = vpop.xlane.xlu1 %899 }
 0x472   :  { %2459 = vpow2.f32 %v903_v15  ;;  %v902_v19 = vsub.f32 %v894_v9, %v900_v18  ;;  %2346 = vmatpush3.msra.mxu0 %v919_v16 }
 0x473   :  { %2355 = vmatprep.subr.mxu0 %v2626_v12 }
 0x474   :  { %v905_v23 = vmul.f32 1.442695, %v902_v19 }
 0x475   :  { %v996_v24 = vpop.permute.xlu1 %995 }
 0x476   :  { %2461 = vpow2.f32 %v905_v23  ;;  %2351 = vmatpush3.msra.mxu1 %v996_v24 }
 0x477   :  { %2360 = vmatprep.subr.mxu1 %v2626_v12 }
 0x479   :  { %v1074_v31 = vpop.permute.xlu1 %1073 }
 0x47d   :  { %v1152_v35 = vpop.permute.xlu1 %1151 }
 0x47f   :  { %v2460_v25 = vpop.eup %2459 }
 0x480   :  { %v907_v26 = vsel %vm414_vm2, %v2460_v25, 0.0 }
 0x481   :  { %908 = vadd.xlane.f32.xlu0 %v907_v26  ;;  %v1150_v38 = vpop.permute.xlu1 %1149 }
 0x483   :  { %v2462_v27 = vpop.eup %2461 }
 0x484   :  { %v910_v28 = vsel %vm414_vm2, %v2462_v27, 0.0 }
 0x485   :  { %911 = vadd.xlane.f32.xlu0 %v910_v28 }
 0x49b   :  { %1071 = vrot.lane.b32.xlu0 %v2813_v21, %s2629_s8 }
 0x50a   :  { %v909_v29 = vpop.xlane.xlu0 %908 }
 0x50b   :  { %2463 = vrcp.f32 %v909_v29 }
 0x50e   :  { %v912_v30 = vpop.xlane.xlu0 %911 }
 0x50f   :  { %2465 = vrcp.f32 %v912_v30 }
 0x512   :  { %v1072_v37 = vpop.permute.xlu0 %1071 }
 0x518   :  { %v2464_v32 = vpop.eup %2463 }
 0x519   :  { %v915_v33 = vmul.f32 %v2464_v32, %v2460_v25 }
 0x51b   :  { %2348 = vmatmul.mubr.msk.f32.vlgmr.msra.gmra.mxu0 %vm414_vm2, %v915_v33 }
 0x51c   :  { %v2466_v34 = vpop.eup %2465  ;;  %2356 = vmatpush3.xpose.msk.msra.mxu0 %vm414_vm2, %v1074_v31  ;;  %2357 = vmatprep.mubr.msk.f32.mxu0 %vm2627_vm1, %v2626_v12 }
 0x51d   :  { %v916_v36 = vmul.f32 %v2466_v34, %v2462_v27  ;;  %2365 = vmatprep.subr.mxu0 %v2626_v12 }
 0x51f   :  { %2353 = vmatmul.mubr.msk.f32.vlgmr.msra.gmra.mxu1 %vm414_vm2, %v916_v36  ;;  %2358 = vmatmul.mubr.msk.f32.vlgmr.msra.gmra.mxu0 %vm414_vm2, %v1072_v37 }
 0x520   :  { %2361 = vmatpush3.xpose.msk.msra.mxu1 %vm414_vm2, %v1152_v35  ;;  %2362 = vmatprep.mubr.msk.f32.mxu1 %vm2627_vm1, %v2626_v12 }
 0x521   :  { %2370 = vmatprep.subr.mxu1 %v2626_v12  ;;  %2367 = vmatprep.mubr.msk.f32.mxu0 %vm2627_vm1, %v2626_v12 }
 0x523   :  { %2363 = vmatmul.mubr.msk.f32.vlgmr.msra.gmra.mxu1 %vm414_vm2, %v1150_v38 }
 0x524   :  { %2372 = vmatprep.mubr.msk.f32.mxu1 %vm2627_vm1, %v2626_v12 }
 0x5db   :  { %v2923_v39 = vpop.f32.mrf.mxu0 }
 0x5dd   :  { %v2349_v40 = vpop.f32.mrf.mxu0 }
 0x5df   :  { %v2925_v41 = vpop.f32.mrf.mxu1  ;;  %v1145_v42 = vpop.f32.mrf.mxu0 }
 0x5e0   :  { %v1227_v43 = vmul.f32 0.35355338, %v1145_v42 }
 0x5e1   :  { %v2354_v44 = vpop.f32.mrf.mxu1  ;;  %v2359_v45 = vpop.f32.mrf.mxu0 }
 0x5e2   :  { %v1229_v46 = vsel %vm414_vm2, %v1227_v43, -inf  ;;  %v1770_v44 = vld [vmem:[#allocation8 + $0x18] sm:$0xff]  ;;  %v1769_v45 = vld [vmem:[#allocation8 + $0x10] sm:$0xff] }
 0x5e3   :  { %1230 = vmax.xlane.f32.xlu0 %v1229_v46  ;;  %v1223_v47 = vpop.f32.mrf.mxu1  ;;  %v1767_v46 = vld [vmem:[#allocation8] sm:$0xff] }
 0x5e4   :  { %v1228_v48 = vmul.f32 0.35355338, %v1223_v47 }
 0x5e5   :  { %v2364_v50 = vpop.f32.mrf.mxu1 }
 0x5e6   :  { %v1232_v52 = vsel %vm414_vm2, %v1228_v48, -inf }
 0x5e7   :  { %1233 = vmax.xlane.f32.xlu1 %v1232_v52 }
 0x5f8   :  { %1327 = vrot.lane.b32.xlu1 %v2859_v49, %s2629_s8 }
 0x5f9   :  { %1251 = vrot.lane.b32.xlu0 %v2862_v51, %s2629_s8 }
 0x5fc   :  { %1405 = vrot.lane.b32.xlu1 %v2809_v20, %s2630_s29 }
 0x600   :  { %1483 = vrot.lane.b32.xlu1 %v2804_v17, %s2630_s29 }
 0x604   :  { %1481 = vrot.lane.b32.xlu1 %v2826_v22, %s2630_s29 }
 0x66c   :  { %v1231_v53 = vpop.xlane.xlu0 %1230 }
 0x66d   :  { %v1235_v54 = vsub.f32 %v1227_v43, %v1231_v53 }
 0x66f   :  { %v1237_v55 = vmul.f32 1.442695, %v1235_v54 }
 0x670   :  { %v1252_v56 = vpop.permute.xlu0 %1251  ;;  %v1234_v57 = vpop.xlane.xlu1 %1233 }
 0x671   :  { %2467 = vpow2.f32 %v1237_v55  ;;  %v1236_v58 = vsub.f32 %v1228_v48, %v1234_v57  ;;  %2366 = vmatpush3.msra.mxu0 %v1252_v56 }
 0x672   :  { %2375 = vmatprep.subr.mxu0 %v2626_v12 }
 0x673   :  { %v1239_v59 = vmul.f32 1.442695, %v1236_v58 }
 0x674   :  { %v1328_v60 = vpop.permute.xlu1 %1327 }
 0x675   :  { %2469 = vpow2.f32 %v1239_v59  ;;  %2371 = vmatpush3.msra.mxu1 %v1328_v60 }
 0x676   :  { %2380 = vmatprep.subr.mxu1 %v2626_v12 }
 0x678   :  { %v1406_v3 = vpop.permute.xlu1 %1405 }
 0x67c   :  { %v1484_v8 = vpop.permute.xlu1 %1483 }
 0x67e   :  { %v2468_v17 = vpop.eup %2467 }
 0x67f   :  { %v1241_v20 = vsel %vm414_vm2, %v2468_v17, 0.0 }
 0x680   :  { %1242 = vadd.xlane.f32.xlu0 %v1241_v20  ;;  %v1482_v10 = vpop.permute.xlu1 %1481 }
 0x682   :  { %v2470_v22 = vpop.eup %2469 }
 0x683   :  { %v1244_v61 = vsel %vm414_vm2, %v2470_v22, 0.0 }
 0x684   :  { %1245 = vadd.xlane.f32.xlu0 %v1244_v61 }
 0x69a   :  { %1403 = vrot.lane.b32.xlu0 %v2813_v21, %s2630_s29 }
 0x709   :  { %v1243_v63 = vpop.xlane.xlu0 %1242 }
 0x70a   :  { %2471 = vrcp.f32 %v1243_v63  ;;  %v2197_v63 = vld [vmem:[%s3056_s10] ss:$0 sm:$0xff] }
 0x70d   :  { %v1246_v1 = vpop.xlane.xlu0 %1245 }
 0x70e   :  { %2473 = vrcp.f32 %v1246_v1 }
 0x711   :  { %v1404_v21 = vpop.permute.xlu0 %1403 }
 0x717   :  { %v2472_v4 = vpop.eup %2471 }
 0x718   :  { %v1249_v6 = vmul.f32 %v2472_v4, %v2468_v17 }
 0x71a   :  { %2368 = vmatmul.mubr.msk.f32.vlgmr.msra.gmra.mxu0 %vm414_vm2, %v1249_v6 }
 0x71b   :  { %v2474_v7 = vpop.eup %2473  ;;  %2376 = vmatpush3.xpose.msk.msra.mxu0 %vm414_vm2, %v1406_v3  ;;  %2377 = vmatprep.mubr.msk.f32.mxu0 %vm2627_vm1, %v2626_v12 }
 0x71c   :  { %v1250_v9 = vmul.f32 %v2474_v7, %v2470_v22  ;;  %2385 = vmatprep.subr.mxu0 %v2626_v12 }
 0x71e   :  { %2373 = vmatmul.mubr.msk.f32.vlgmr.msra.gmra.mxu1 %vm414_vm2, %v1250_v9  ;;  %2378 = vmatmul.mubr.msk.f32.vlgmr.msra.gmra.mxu0 %vm414_vm2, %v1404_v21 }
 0x71f   :  { %2381 = vmatpush3.xpose.msk.msra.mxu1 %vm414_vm2, %v1484_v8  ;;  %2382 = vmatprep.mubr.msk.f32.mxu1 %vm2627_vm1, %v2626_v12 }
 0x720   :  { %2390 = vmatprep.subr.mxu1 %v2626_v12  ;;  %2387 = vmatprep.mubr.msk.f32.mxu0 %vm2627_vm1, %v2626_v12 }
 0x722   :  { %2383 = vmatmul.mubr.msk.f32.vlgmr.msra.gmra.mxu1 %vm414_vm2, %v1482_v10 }
 0x723   :  { %2392 = vmatprep.mubr.msk.f32.mxu1 %vm2627_vm1, %v2626_v12 }
 0x7da   :  { %v1323_v11 = vpop.f32.mrf.mxu0 }
 0x7dc   :  { %v2369_v13 = vpop.f32.mrf.mxu0 }
 0x7de   :  { %v1399_v14 = vpop.f32.mrf.mxu1  ;;  %v1477_v15 = vpop.f32.mrf.mxu0 }
 0x7df   :  { %v1559_v16 = vmul.f32 0.35355338, %v1477_v15 }
 0x7e0   :  { %v2374_v18 = vpop.f32.mrf.mxu1  ;;  %v2379_v19 = vpop.f32.mrf.mxu0 }
 0x7e1   :  { %v1561_v23 = vsel %vm414_vm2, %v1559_v16, -inf  ;;  %v1909_v19 = vld [vmem:[#allocation10 + $0x18] sm:$0xff] }
 0x7e2   :  { %1562 = vmax.xlane.f32.xlu0 %v1561_v23  ;;  %v1555_v24 = vpop.f32.mrf.mxu1  ;;  %v1907_v23 = vld [vmem:[#allocation10 + $0x8] sm:$0xff] }
 0x7e3   :  { %v1560_v25 = vmul.f32 0.35355338, %v1555_v24  ;;  %v1906_v24 = vld [vmem:[#allocation10] sm:$0xff] }
 0x7e4   :  { %v2384_v26 = vpop.f32.mrf.mxu1 }
 0x7e5   :  { %v1564_v27 = vsel %vm414_vm2, %v1560_v25, -inf  ;;  %v2006_v26 = vld [vmem:[%s3061_s15 + $0x30] sm:$0xff] }
 0x7e6   :  { %1565 = vmax.xlane.f32.xlu1 %v1564_v27  ;;  %v2005_v27 = vld [vmem:[%s3061_s15 + $0x28] sm:$0xff] }
 0x7f7   :  { %1659 = vrot.lane.b32.xlu1 %v2859_v49, %s2630_s29 }
 0x7fb   :  { %1737 = vrot.lane.b32.xlu1 %v2923_v39, %s2622_s2 }
 0x7ff   :  { %1739 = vrot.lane.b32.xlu1 %v2925_v41, %s2622_s2 }
 0x803   :  { %1747 = vrot.lane.b32.xlu1 %v1399_v14, %s2631_s0 }
 0x86b   :  { %v1563_v12 = vpop.xlane.xlu0 %1562 }
 0x86c   :  { %v1567_v28 = vsub.f32 %v1559_v16, %v1563_v12  ;;  %v2004_v12 = vld [vmem:[%s3061_s15 + $0x20] sm:$0xff] }
 0x86e   :  { %v1569_v29 = vmul.f32 1.442695, %v1567_v28 }
 0x86f   :  { %v1566_v30 = vpop.xlane.xlu1 %1565 }
 0x870   :  { %2475 = vpow2.f32 %v1569_v29  ;;  %v1568_v31 = vsub.f32 %v1560_v25, %v1566_v30  ;;  %v2007_v25 = vld [vmem:[%s3061_s15 + $0x38] sm:$0xff] }
 0x872   :  { %v1571_v32 = vmul.f32 1.442695, %v1568_v31 }
 0x873   :  { %v1660_v33 = vpop.permute.xlu1 %1659 }
 0x874   :  { %2477 = vpow2.f32 %v1571_v32  ;;  %2391 = vmatpush3.msra.mxu1 %v1660_v33 }
 0x875   :  { %2406 = vmatprep.subr.mxu1 %v1909_v19 }
 0x877   :  { %v1738_v53 = vpop.permute.xlu1 %1737 }
 0x878   :  { %v1759_v56 = vsel %vm414_vm2, %v2885_v62, %v1738_v53 }
 0x87b   :  { %v1740_v54 = vpop.permute.xlu1 %1739 }
 0x87c   :  { %v1760_v17 = vsel %vm414_vm2, %v2887_v0, %v1740_v54 }
 0x87d   :  { %v2476_v34 = vpop.eup %2475 }
 0x87e   :  { %v1573_v49 = vsel %vm414_vm2, %v2476_v34, 0.0 }
 0x87f   :  { %1574 = vadd.xlane.f32.xlu0 %v1573_v49  ;;  %v1748_v57 = vpop.permute.xlu1 %1747  ;;  %v2200_v49 = vld [vmem:[%s3057_s11] ss:$0 sm:$0xff] }
 0x880   :  { %v1763_v20 = vsel %vm1761_vm4, %v1760_v17, %v1748_v57 }
 0x881   :  { %v2478_v35 = vpop.eup %2477 }
 0x882   :  { %v1576_v36 = vsel %vm414_vm2, %v2478_v35, 0.0 }
 0x883   :  { %1577 = vadd.xlane.f32.xlu0 %v1576_v36  ;;  %v2201_v36 = vld [vmem:[%s3058_s12] ss:$0 sm:$0xff] }
 0x899   :  { %1583 = vrot.lane.b32.xlu0 %v2862_v51, %s2630_s29  ;;  %v1768_v51 = vld [vmem:[#allocation8 + $0x8] sm:$0xff] }
 0x89d   :  { %1745 = vrot.lane.b32.xlu0 %v1323_v11, %s2631_s0 }
 0x908   :  { %v1575_v37 = vpop.xlane.xlu0 %1574 }
 0x909   :  { %2479 = vrcp.f32 %v1575_v37 }
 0x90c   :  { %v1578_v38 = vpop.xlane.xlu0 %1577 }
 0x90d   :  { %2481 = vrcp.f32 %v1578_v38 }
 0x910   :  { %v1584_v39 = vpop.permute.xlu0 %1583 }
 0x911   :  { %2386 = vmatpush3.msra.mxu0 %v1584_v39 }
 0x912   :  { %2395 = vmatprep.subr.mxu0 %v1770_v44 }
 0x914   :  { %v1746_v55 = vpop.permute.xlu0 %1745 }
 0x915   :  { %v1762_v58 = vsel %vm1761_vm4, %v1759_v56, %v1746_v55  ;;  %v2205_v55 = vld [vmem:[%s3062_s16] ss:$0 sm:$0xff] }
 0x916   :  { %v2480_v40 = vpop.eup %2479 }
 0x917   :  { %v1581_v41 = vmul.f32 %v2480_v40, %v2476_v34 }
 0x919   :  { %2388 = vmatmul.mubr.msk.f32.vlgmr.msra.gmra.mxu0 %vm414_vm2, %v1581_v41 }
 0x91a   :  { %v2482_v42 = vpop.eup %2481  ;;  %2396 = vmatpush3.msra.mxu0 %v1770_v44  ;;  %v2002_v44 = vld [vmem:[%s3061_s15 + $0x10] sm:$0xff] }
 0x91b   :  { %v1582_v43 = vmul.f32 %v2482_v42, %v2478_v35  ;;  %2397 = vmatprep.subr.mxu0 %v1769_v45 }
 0x91c   :  { %2398 = vmatpush3.msra.mxu0 %v1769_v45  ;;  %v2001_v45 = vld [vmem:[%s3061_s15 + $0x8] sm:$0xff] }
 0x91d   :  { %2393 = vmatmul.mubr.msk.f32.vlgmr.msra.gmra.mxu1 %vm414_vm2, %v1582_v43  ;;  %2399 = vmatprep.subr.mxu0 %v1768_v51  ;;  %v2003_v43 = vld [vmem:[%s3061_s15 + $0x18] sm:$0xff] }
 0x91e   :  { %2400 = vmatpush3.msra.mxu0 %v1768_v51  ;;  %2407 = vmatpush3.msra.mxu1 %v1909_v19  ;;  %v2000_v51 = vld [vmem:[%s3061_s15] sm:$0xff] }
 0x91f   :  { %2401 = vmatprep.subr.mxu0 %v1767_v46  ;;  %v2209_v19 = vld [vmem:[%s3064_s18] ss:$0 sm:$0xff] }
 0x920   :  { %2402 = vmatpush3.msra.mxu0 %v1767_v46  ;;  %v2202_v46 = vld [vmem:[%s3060_s14] ss:$0 sm:$0xff] }
 0x921   :  { %2417 = vmatprep.subr.mxu0 %v2007_v25 }
 0x9d9   :  { %v1655_v47 = vpop.f32.mrf.mxu0 }
 0x9da   :  { %1753 = vrot.lane.b32.xlu0 %v1655_v47, %s2632_s20 }
 0x9db   :  { %v2389_v48 = vpop.f32.mrf.mxu0 }
 0x9dd   :  { %v1731_v50 = vpop.f32.mrf.mxu1 }
 0x9de   :  { %1755 = vrot.lane.b32.xlu1 %v1731_v50, %s2632_s20 }
 0x9df   :  { %v2394_v52 = vpop.f32.mrf.mxu1 }
 0xa4c   :  { %v1754_v59 = vpop.permute.xlu0 %1753 }
 0xa4d   :  { %v1765_v60 = vsel %vm1764_vm3, %v1762_v58, %v1754_v59 }
 0xa4e   :  { %2403 = vmatprep.mubr.msk.f32.mxu0 %vm148_vm0, %v1765_v60 }
 0xa50   :  { %v1756_v22 = vpop.permute.xlu1 %1755 }
 0xa51   :  { %v1766_v61 = vsel %vm1764_vm3, %v1763_v20, %v1756_v22 }
 0xa52   :  { %2404 = vmatmul.mubr.msk.f32.vlgmr.msra.gmra.mxu0 %vm148_vm0, %v1766_v61 }
 0xa53   :  { %2418 = vmatpush3.msra.mxu0 %v2007_v25 }
 0xa54   :  { %2419 = vmatprep.subr.mxu0 %v2006_v26 }
 0xa55   :  { %2420 = vmatpush3.msra.mxu0 %v2006_v26 }
 0xa56   :  { %2421 = vmatprep.subr.mxu0 %v2005_v27 }
 0xa57   :  { %2422 = vmatpush3.msra.mxu0 %v2005_v27 }
 0xa58   :  { %2423 = vmatprep.subr.mxu0 %v2004_v12 }
 0xa59   :  { %2424 = vmatpush3.msra.mxu0 %v2004_v12 }
 0xa5a   :  { %2425 = vmatprep.subr.mxu0 %v2003_v43 }
 0xa5b   :  { %2426 = vmatpush3.msra.mxu0 %v2003_v43 }
 0xa5c   :  { %2427 = vmatprep.subr.mxu0 %v2002_v44 }
 0xa5d   :  { %2428 = vmatpush3.msra.mxu0 %v2002_v44 }
 0xa5e   :  { %2429 = vmatprep.subr.mxu0 %v2001_v45 }
 0xa5f   :  { %2430 = vmatpush3.msra.mxu0 %v2001_v45 }
 0xa60   :  { %2431 = vmatprep.subr.mxu0 %v2000_v51 }
 0xa61   :  { %2432 = vmatpush3.msra.mxu0 %v2000_v51 }
 0xb12   :  { %v2405_v62 = vpop.f32.mrf.mxu0 }
 0xb13   :  { %v1856_v1 = vadd.f32 %v2405_v62, %v2197_v63 }
 0xb14   :  { %v1850_v3 = vpop.f32.mrf.mxu0 }
 0xb15   :  { %v1851_v4 = vadd.f32 %v2197_v63, %v1850_v3  ;;  %v1860_v6 = vadd.f32 %v1856_v1, %v2780_v5 }
 0xb17   :  { %v1866_v7 = vsel %vm148_vm0, %v1860_v6, 0.0  ;;  %v1859_v8 = vadd.f32 %v1851_v4, %v2770_v2  ;;  %v1908_v2 = vld [vmem:[#allocation10 + $0x10] sm:$0xff] }
 0xb18   :  { %1867 = vadd.xlane.f32.xlu1 %v1866_v7  ;;  %2408 = vmatprep.subr.mxu1 %v1908_v2 }
 0xb19   :  { %v1863_v0 = vsel %vm148_vm0, %v1859_v8, 0.0  ;;  %2409 = vmatpush3.msra.mxu1 %v1908_v2 }
 0xb1a   :  { %1864 = vadd.xlane.f32.xlu0 %v1863_v0  ;;  %2410 = vmatprep.subr.mxu1 %v1907_v23 }
 0xb1b   :  { %2411 = vmatpush3.msra.mxu1 %v1907_v23 }
 0xb1c   :  { %2412 = vmatprep.subr.mxu1 %v1906_v24 }
 0xb1d   :  { %2413 = vmatpush3.msra.mxu1 %v1906_v24 }
 0xba1   :  { %v1868_v9 = vpop.xlane.xlu1 %1867 }
 0xba2   :  { %v1871_v21 = vmul.f32 0.03125, %v1868_v9 }
 0xba3   :  { %v1865_v10 = vpop.xlane.xlu0 %1864 }
 0xba4   :  { %v1870_v11 = vmul.f32 0.03125, %v1865_v10  ;;  %v1873_v13 = vsub.f32 %v1860_v6, %v1871_v21 }
 0xba6   :  { %v1872_v14 = vsub.f32 %v1859_v8, %v1870_v11  ;;  %v1875_v18 = vmul.f32 %v1873_v13, %v1873_v13 }
 0xba8   :  { %v1874_v15 = vmul.f32 %v1872_v14, %v1872_v14  ;;  %v1879_v5 = vsel %vm148_vm0, %v1875_v18, 0.0 }
 0xbaa   :  { %v1876_v16 = vsel %vm148_vm0, %v1874_v15, 0.0 }
 0xbab   :  { %1877 = vadd.xlane.f32.xlu0 %v1876_v16  ;;  %v2208_v16 = vld [vmem:[%s3063_s17] ss:$0 sm:$0xff] }
 0xbaf   :  { %1880 = vadd.xlane.f32.xlu0 %v1879_v5 }
 0xc34   :  { %v1878_v28 = vpop.xlane.xlu0 %1877 }
 0xc35   :  { %v1882_v29 = vmul.f32 0.03125, %v1878_v28 }
 0xc37   :  { %v1884_v30 = vadd.f32 1e-05, %v1882_v29 }
 0xc38   :  { %v1881_v31 = vpop.xlane.xlu0 %1880 }
 0xc39   :  { %2483 = vrsqrt.f32 %v1884_v30  ;;  %v1883_v32 = vmul.f32 0.03125, %v1881_v31 }
 0xc3b   :  { %v1885_v33 = vadd.f32 1e-05, %v1883_v32 }
 0xc3d   :  { %2485 = vrsqrt.f32 %v1885_v33 }
 0xc46   :  { %v2484_v34 = vpop.eup %2483 }
 0xc47   :  { %v1888_v35 = vmul.f32 %v2484_v34, %v1872_v14 }
 0xc49   :  { %v1896_v37 = vmul.f32 %v2200_v49, %v1888_v35 }
 0xc4a   :  { %v2486_v38 = vpop.eup %2485 }
 0xc4b   :  { %v1889_v39 = vmul.f32 %v2486_v38, %v1873_v13  ;;  %v1904_v40 = vadd.f32 %v2201_v36, %v1896_v37 }
 0xc4d   :  { %v1897_v41 = vmul.f32 %v2200_v49, %v1889_v39  ;;  %2414 = vmatprep.mubr.msk.f32.mxu1 %vm148_vm0, %v1904_v40 }
 0xc4f   :  { %v1905_v42 = vadd.f32 %v2201_v36, %v1897_v41 }
 0xc51   :  { %2415 = vmatmul.mubr.msk.f32.vlgmr.msra.gmra.mxu1 %vm148_vm0, %v1905_v42 }
 0xd11   :  { %v2416_v47 = vpop.f32.mrf.mxu1 }
 0xd12   :  { %v1995_v48 = vadd.f32 %v2416_v47, %v2202_v46 }
 0xd13   :  { %v1989_v50 = vpop.f32.mrf.mxu1 }
 0xd14   :  { %v1990_v52 = vadd.f32 %v2202_v46, %v1989_v50  ;;  %v1999_v54 = vmax.f32 %v1995_v48, 0.0 }
 0xd16   :  { %v1998_v53 = vmax.f32 %v1990_v52, 0.0 }
 0xd18   :  { %2433 = vmatprep.mubr.msk.f32.mxu0 %vm2015_vm5, %v1998_v53 }
 0xd19   :  { %2434 = vmatmul.mubr.msk.f32.vlgmr.msra.gmra.mxu0 %vm2015_vm5, %v1999_v54 }
 0xdd9   :  { %v2435_v56 = vpop.f32.mrf.mxu0 }
 0xdda   :  { %v2094_v57 = vadd.f32 %v2435_v56, %v2205_v55 }
 0xddb   :  { %v2088_v58 = vpop.f32.mrf.mxu0 }
 0xddc   :  { %v2089_v59 = vadd.f32 %v2205_v55, %v2088_v58  ;;  %v2098_v60 = vadd.f32 %v2094_v57, %v1905_v42 }
 0xdde   :  { %v2104_v17 = vsel %vm148_vm0, %v2098_v60, 0.0  ;;  %v2097_v20 = vadd.f32 %v2089_v59, %v1904_v40 }
 0xddf   :  { %2105 = vadd.xlane.f32.xlu1 %v2104_v17 }
 0xde0   :  { %v2101_v22 = vsel %vm148_vm0, %v2097_v20, 0.0 }
 0xde1   :  { %2102 = vadd.xlane.f32.xlu0 %v2101_v22 }
 0xe68   :  { %v2106_v61 = vpop.xlane.xlu1 %2105 }
 0xe69   :  { %v2108_v63 = vmul.f32 0.03125, %v2106_v61 }
 0xe6a   :  { %v2103_v62 = vpop.xlane.xlu0 %2102 }
 0xe6b   :  { %v2110_v1 = vsub.f32 %v2098_v60, %v2108_v63  ;;  %v2107_v3 = vmul.f32 0.03125, %v2103_v62 }
 0xe6d   :  { %v2109_v4 = vsub.f32 %v2097_v20, %v2107_v3  ;;  %v2112_v6 = vmul.f32 %v2110_v1, %v2110_v1 }
 0xe6f   :  { %v2116_v7 = vsel %vm148_vm0, %v2112_v6, 0.0  ;;  %v2111_v8 = vmul.f32 %v2109_v4, %v2109_v4 }
 0xe70   :  { %2117 = vadd.xlane.f32.xlu1 %v2116_v7 }
 0xe71   :  { %v2113_v0 = vsel %vm148_vm0, %v2111_v8, 0.0 }
 0xe72   :  { %2114 = vadd.xlane.f32.xlu0 %v2113_v0 }
 0xef9   :  { %v2118_v9 = vpop.xlane.xlu1 %2117 }
 0xefa   :  { %v2120_v21 = vmul.f32 0.03125, %v2118_v9 }
 0xefb   :  { %v2115_v10 = vpop.xlane.xlu0 %2114 }
 0xefc   :  { %v2122_v11 = vadd.f32 1e-05, %v2120_v21  ;;  %v2119_v13 = vmul.f32 0.03125, %v2115_v10 }
 0xefe   :  { %2487 = vrsqrt.f32 %v2122_v11  ;;  %v2121_v14 = vadd.f32 1e-05, %v2119_v13 }
 0xf00   :  { %2489 = vrsqrt.f32 %v2121_v14 }
 0xf0b   :  { %v2488_v15 = vpop.eup %2487 }
 0xf0c   :  { %v2126_v18 = vmul.f32 %v2488_v15, %v2110_v1 }
 0xf0d   :  { %v2490_v5 = vpop.eup %2489 }
 0xf0e   :  { %v2125_v2 = vmul.f32 %v2490_v5, %v2109_v4  ;;  %v2134_v23 = vmul.f32 %v2208_v16, %v2126_v18 }
 0xf10   :  { %v2133_v24 = vmul.f32 %v2208_v16, %v2125_v2  ;;  %v2142_v25 = vadd.f32 %v2209_v19, %v2134_v23 }
 0xf12   :  { %v2141_v26 = vadd.f32 %v2209_v19, %v2133_v24  ;;  %2144 = vst.msk [vmem:[#allocation11 + $0x8] sm:$0xff] %vm148_vm0, %v2142_v25 }
 0xf14   :  { %2143 = vst.msk [vmem:[#allocation11] sm:$0xff] %vm148_vm0, %v2141_v26 }
 0xf15   :  { %2602 = shalt.err (!%p2599_p1)
}
 0xf16   :  { %2156 = dma.vmem_to_hbm [thread:$0]  %s2151_s24, 256, %s3065_s19, [#allocation4], %s2621_s22, %s2621_s22, %s2622_s2  }
 0xf17   :  { %2617 = dma.done.wait [#allocation4], 256  }
 0xf18   :  { %2618 = vsyncadd [#allocation4], 4294967040 }
 0xf19   :  { %2160 = vsyncpa [#allocation3], 1 }
 0xf1a   :  { %2161 = vsyncpa [#allocation6], 1 }
 0xf1b   :  { %2162 = vsyncpa [#allocation9], 1 }
 0xf1c   :  { %2163 = vsyncpa [#allocation4], 1 }

</bundles_post_ra>
